<compile_context>
chip_gen: v6e
topology: v6e:2x2x1
jax: 0.10.0
libtpu: 0.0.40
codegen_flags: <defaults>
</compile_context>

<pallas_src>
import functools

import jax
import jax.numpy as jnp
from jax.experimental import pallas as pl
from jax.experimental.pallas import tpu as pltpu


NEG_SLOPE = 0.01   # nn.LeakyReLU default negative_slope
_LANE = 128


def mlp_kernel(x_ref, w1_ref, b1_ref, w2_ref, b2_ref, w3_ref, b3_ref,
               w4_ref, b4_ref, o_ref, *, bf16_epilogue=True):
    # Transposed formulation: h_t = act(W @ h_t + b).  MXU ops take bf16
    # operands and accumulate in f32; the epilogue runs in bf16 (v6e/v7x) or
    # f32 (v5e) and hands a bf16 operand to the next layer.
    act_dtype = jnp.bfloat16 if bf16_epilogue else jnp.float32

    def act(acc_f32, b_ref):
        z = acc_f32.astype(act_dtype) + b_ref[...].astype(act_dtype)
        z = jnp.maximum(z, NEG_SLOPE * z)      # 2 VPU ops (mul+max), no select
        return z.astype(jnp.bfloat16)          # next layer's MXU operand

    h = act(jnp.dot(w1_ref[...], x_ref[...],
                    preferred_element_type=jnp.float32), b1_ref)
    h = act(jnp.dot(w2_ref[...], h, preferred_element_type=jnp.float32), b2_ref)
    h = act(jnp.dot(w3_ref[...], h, preferred_element_type=jnp.float32), b3_ref)

    # Layer 4 (256 -> 1): (1,256) @ (256,TB) -> lane-dense (1, tile_b) row,
    # stored with an unmasked vst.  No transpose anywhere in the kernel.
    y = jnp.dot(w4_ref[...], h, preferred_element_type=jnp.float32)
    o_ref[...] = (y + b4_ref[...]).astype(o_ref.dtype)


def prepare_params(params):
    """One-time weight prep (hoist out of inference loops): pad w1's feature dim
    to the lane width, cast weights to bf16, reshape biases to (out, 1) columns."""
    w1 = params["w1"]                                    # (256, in_features)
    in_f = w1.shape[1]
    in_pad = ((in_f + _LANE - 1) // _LANE) * _LANE
    w1 = jnp.pad(w1, ((0, 0), (0, in_pad - in_f)))
    return {
        "w1": w1.astype(jnp.bfloat16),
        "w2": params["w2"].astype(jnp.bfloat16),
        "w3": params["w3"].astype(jnp.bfloat16),
        "w4": params["w4"].astype(jnp.bfloat16),         # (1, 256)
        "b1": params["b1"].reshape(-1, 1),               # kept f32; cast in-kernel
        "b2": params["b2"].reshape(-1, 1),
        "b3": params["b3"].reshape(-1, 1),
        "b4": params["b4"].reshape(1, 1),
    }


def choose_tile_b(batch, target=1024):
    """Largest tile up to `target`, but keep >= 2 grid tiles when the batch allows
    so the 'parallel' grid axis can shard across both TensorCores on v7x."""
    b128 = max(_LANE, ((batch + _LANE - 1) // _LANE) * _LANE)
    if b128 >= 2 * _LANE:
        half = max(_LANE, (b128 // 2) // _LANE * _LANE)
        return min(target, half)
    return _LANE


@functools.partial(jax.jit, static_argnames=("tile_b", "bf16_epilogue"))
def e2_forward(x, prepared, tile_b=1024, bf16_epilogue=True):
    """x: [B, in_features] float32. prepared: output of prepare_params()."""
    assert tile_b % _LANE == 0, "tile_b must be a multiple of 128 (lane width)"
    B, F = x.shape
    F_pad = prepared["w1"].shape[1]
    B_pad = ((B + tile_b - 1) // tile_b) * tile_b

    # Single fused pass over x: zero-pad (features -> F_pad, batch -> B_pad),
    # transpose to feature-major, cast to bf16.  Result: (F_pad, B_pad).
    x_t = jnp.pad(x, ((0, B_pad - B), (0, F_pad - F))).T.astype(jnp.bfloat16)

    w1, w2, w3, w4 = prepared["w1"], prepared["w2"], prepared["w3"], prepared["w4"]
    b1, b2, b3, b4 = prepared["b1"], prepared["b2"], prepared["b3"], prepared["b4"]

    grid = (B_pad // tile_b,)

    def resident(a):                                   # fully-resident VMEM block
        return pl.BlockSpec(a.shape, lambda i: (0, 0))

    flops = 2 * B_pad * (F_pad * 256 + 256 * 512 + 512 * 256 + 256 * 1)
    bytes_accessed = (x_t.size * 2
                      + (w1.size + w2.size + w3.size + w4.size) * 2
                      + (b1.size + b2.size + b3.size + b4.size) * 4
                      + B_pad * 4)

    kernel = functools.partial(mlp_kernel, bf16_epilogue=bf16_epilogue)

    out = pl.pallas_call(
        kernel,
        out_shape=jax.ShapeDtypeStruct((1, B_pad), jnp.float32),
        grid_spec=pltpu.PrefetchScalarGridSpec(
            num_scalar_prefetch=0,
            grid=grid,
            in_specs=[
                pl.BlockSpec((F_pad, tile_b), lambda i: (0, i)),   # batch tile on lanes
                resident(w1), resident(b1),
                resident(w2), resident(b2),
                resident(w3), resident(b3),
                resident(w4), resident(b4),
            ],
            out_specs=pl.BlockSpec((1, tile_b), lambda i: (0, i)),  # lane-dense row
        ),
        compiler_params=pltpu.CompilerParams(
            dimension_semantics=("parallel",),
            vmem_limit_bytes=48 * 1024 * 1024),
        cost_estimate=pl.CostEstimate(
            flops=flops, transcendentals=0, bytes_accessed=bytes_accessed),
    )(x_t, w1, b1, w2, b2, w3, b3, w4, b4)

    # (1, B_pad) lane-dense slab -> (B, 1)
    return out.reshape(B_pad, 1)[:B]


def init_params(key, in_features=85):
    """Deterministic synthetic init matching nn.Linear layout: w [out, in], b [out]."""
    dims = [(256, in_features), (512, 256), (256, 512), (1, 256)]
    params = {}
    for idx, (fan_out, fan_in) in enumerate(dims, start=1):
        key, kw, kb = jax.random.split(key, 3)
        bound = 1.0 / jnp.sqrt(jnp.float32(fan_in))
        params[f"w{idx}"] = jax.random.uniform(
            kw, (fan_out, fan_in), jnp.float32, -bound, bound)
        params[f"b{idx}"] = jax.random.uniform(
            kb, (fan_out,), jnp.float32, -bound, bound)
    return params


def e2_reference(x, params, mirror_kernel=False):
    """Pure-JAX reference (PyTorch [out, in] layout).
    mirror_kernel=True reproduces the kernel numerics (bf16 operands/epilogue)."""
    if mirror_kernel:
        h = x.astype(jnp.bfloat16)
        for i in range(1, 4):
            acc = jnp.dot(h, params[f"w{i}"].astype(jnp.bfloat16).T,
                          preferred_element_type=jnp.float32)
            z = acc.astype(jnp.bfloat16) + params[f"b{i}"].astype(jnp.bfloat16)
            h = jnp.maximum(z, NEG_SLOPE * z)
        y = jnp.dot(h, params["w4"].astype(jnp.bfloat16).T,
                    preferred_element_type=jnp.float32)
        return y + params["b4"]
    h = x
    for i in range(1, 4):
        h = jnp.dot(h, params[f"w{i}"].T,
                    precision=jax.lax.Precision.HIGHEST) + params[f"b{i}"]
        h = jnp.maximum(h, NEG_SLOPE * h)
    return jnp.dot(h, params["w4"].T,
                   precision=jax.lax.Precision.HIGHEST) + params["b4"]


if __name__ == "__main__":
    key = jax.random.PRNGKey(0)
    k_x1, k_x2, k_p = jax.random.split(key, 3)

    F = 85
    params = init_params(k_p, in_features=F)
    prepared = prepare_params(params)            # hoisted one-time weight prep

    # Case 1: odd batch -> exercises batch padding and a multi-tile grid.
    B1 = 300
    x1 = jax.random.normal(k_x1, (B1, F), jnp.float32)
    out1 = jax.block_until_ready(
        e2_forward(x1, prepared, tile_b=choose_tile_b(B1)))
    assert out1.shape == (B1, 1), out1.shape

    # Case 2: larger batch at a large tile (2-tile grid -> both TCs on v7x).
    B2 = 2048
    x2 = jax.random.normal(k_x2, (B2, F), jnp.float32)
    out2 = jax.block_until_ready(e2_forward(x2, prepared, tile_b=1024))
    assert out2.shape == (B2, 1), out2.shape

    for x, out in ((x1, out1), (x2, out2)):
        ref_mirror = e2_reference(x, params, mirror_kernel=True)   # kernel math
        ref_f32 = e2_reference(x, params, mirror_kernel=False)     # PyTorch f32
        assert jnp.allclose(out, ref_mirror, atol=2e-2, rtol=2e-2), \
            "mismatch vs kernel-mirror (bf16) reference"
        assert jnp.allclose(out, ref_f32, atol=1e-1, rtol=1e-1), \
            "mismatch vs f32 reference"

    print("KERNEL_OK")
</pallas_src>

<mosaic_0001>
module attributes {stable_mosaic.version = 11 : i64} {
  func.func @mlp_kernel(%arg0: i32, %arg1: memref<128x128xbf16, #tpu.memory_space<vmem>>, %arg2: memref<256x128xbf16, #tpu.memory_space<vmem>>, %arg3: memref<256x1xf32, #tpu.memory_space<vmem>>, %arg4: memref<512x256xbf16, #tpu.memory_space<vmem>>, %arg5: memref<512x1xf32, #tpu.memory_space<vmem>>, %arg6: memref<256x512xbf16, #tpu.memory_space<vmem>>, %arg7: memref<256x1xf32, #tpu.memory_space<vmem>>, %arg8: memref<1x256xbf16, #tpu.memory_space<vmem>>, %arg9: memref<1x1xf32, #tpu.memory_space<vmem>>, %arg10: memref<1x128xf32, #tpu.memory_space<vmem>>) attributes {dimension_semantics = [#tpu.dimension_semantics<parallel>], iteration_bounds = array<i64: 3>, scalar_prefetch = 0 : i64, scratch_operands = 0 : i64, tpu.core_type = #tpu.core_type<tc>, window_params = [{transform_indices = @transform_0, window_bounds = array<i64: 128, 128>}, {pipeline_mode = #tpu.pipeline_mode<synchronous>, transform_indices = @transform_1, window_bounds = array<i64: 256, 128>}, {pipeline_mode = #tpu.pipeline_mode<synchronous>, transform_indices = @transform_2, window_bounds = array<i64: 256, 1>}, {pipeline_mode = #tpu.pipeline_mode<synchronous>, transform_indices = @transform_3, window_bounds = array<i64: 512, 256>}, {pipeline_mode = #tpu.pipeline_mode<synchronous>, transform_indices = @transform_4, window_bounds = array<i64: 512, 1>}, {pipeline_mode = #tpu.pipeline_mode<synchronous>, transform_indices = @transform_5, window_bounds = array<i64: 256, 512>}, {pipeline_mode = #tpu.pipeline_mode<synchronous>, transform_indices = @transform_6, window_bounds = array<i64: 256, 1>}, {pipeline_mode = #tpu.pipeline_mode<synchronous>, transform_indices = @transform_7, window_bounds = array<i64: 1, 256>}, {pipeline_mode = #tpu.pipeline_mode<synchronous>, transform_indices = @transform_8, window_bounds = array<i64: 1, 1>}, {transform_indices = @transform_9, window_bounds = array<i64: 1, 128>}]} {
    %c0 = arith.constant 0 : index
    %c0_0 = arith.constant 0 : index
    %0 = vector.load %arg2[%c0, %c0_0] : memref<256x128xbf16, #tpu.memory_space<vmem>>, vector<256x128xbf16>
    %c0_1 = arith.constant 0 : index
    %c0_2 = arith.constant 0 : index
    %1 = vector.load %arg1[%c0_1, %c0_2] : memref<128x128xbf16, #tpu.memory_space<vmem>>, vector<128x128xbf16>
    %cst = arith.constant dense<0.000000e+00> : vector<256x128xf32>
    %2 = tpu.matmul %0, %1, %cst {dimension_numbers = #tpu.dot_dimension_numbers<[1], [0], [0], [1], [0, 0, 1, 1], [], []>} : vector<256x128xbf16>, vector<128x128xbf16>, vector<256x128xf32> -> vector<256x128xf32>
    %3 = arith.truncf %2 : vector<256x128xf32> to vector<256x128xbf16>
    %c0_3 = arith.constant 0 : index
    %c0_4 = arith.constant 0 : index
    %4 = vector.load %arg3[%c0_3, %c0_4] : memref<256x1xf32, #tpu.memory_space<vmem>>, vector<256x1xf32>
    %5 = arith.truncf %4 : vector<256x1xf32> to vector<256x1xbf16>
    %6 = vector.broadcast %5 : vector<256x1xbf16> to vector<256x128xbf16>
    %7 = arith.addf %3, %6 : vector<256x128xbf16>
    %cst_5 = arith.constant 1.000980e-02 : bf16
    %8 = vector.broadcast %cst_5 : bf16 to vector<256x128xbf16>
    %9 = arith.mulf %8, %7 : vector<256x128xbf16>
    %10 = arith.maximumf %7, %9 : vector<256x128xbf16>
    %c0_6 = arith.constant 0 : index
    %c0_7 = arith.constant 0 : index
    %11 = vector.load %arg4[%c0_6, %c0_7] : memref<512x256xbf16, #tpu.memory_space<vmem>>, vector<512x256xbf16>
    %cst_8 = arith.constant dense<0.000000e+00> : vector<512x128xf32>
    %12 = tpu.matmul %11, %10, %cst_8 {dimension_numbers = #tpu.dot_dimension_numbers<[1], [0], [0], [1], [0, 0, 1, 1], [], []>} : vector<512x256xbf16>, vector<256x128xbf16>, vector<512x128xf32> -> vector<512x128xf32>
    %13 = arith.truncf %12 : vector<512x128xf32> to vector<512x128xbf16>
    %c0_9 = arith.constant 0 : index
    %c0_10 = arith.constant 0 : index
    %14 = vector.load %arg5[%c0_9, %c0_10] : memref<512x1xf32, #tpu.memory_space<vmem>>, vector<512x1xf32>
    %15 = arith.truncf %14 : vector<512x1xf32> to vector<512x1xbf16>
    %16 = vector.broadcast %15 : vector<512x1xbf16> to vector<512x128xbf16>
    %17 = arith.addf %13, %16 : vector<512x128xbf16>
    %cst_11 = arith.constant 1.000980e-02 : bf16
    %18 = vector.broadcast %cst_11 : bf16 to vector<512x128xbf16>
    %19 = arith.mulf %18, %17 : vector<512x128xbf16>
    %20 = arith.maximumf %17, %19 : vector<512x128xbf16>
    %c0_12 = arith.constant 0 : index
    %c0_13 = arith.constant 0 : index
    %21 = vector.load %arg6[%c0_12, %c0_13] : memref<256x512xbf16, #tpu.memory_space<vmem>>, vector<256x512xbf16>
    %cst_14 = arith.constant dense<0.000000e+00> : vector<256x128xf32>
    %22 = tpu.matmul %21, %20, %cst_14 {dimension_numbers = #tpu.dot_dimension_numbers<[1], [0], [0], [1], [0, 0, 1, 1], [], []>} : vector<256x512xbf16>, vector<512x128xbf16>, vector<256x128xf32> -> vector<256x128xf32>
    %23 = arith.truncf %22 : vector<256x128xf32> to vector<256x128xbf16>
    %c0_15 = arith.constant 0 : index
    %c0_16 = arith.constant 0 : index
    %24 = vector.load %arg7[%c0_15, %c0_16] : memref<256x1xf32, #tpu.memory_space<vmem>>, vector<256x1xf32>
    %25 = arith.truncf %24 : vector<256x1xf32> to vector<256x1xbf16>
    %26 = vector.broadcast %25 : vector<256x1xbf16> to vector<256x128xbf16>
    %27 = arith.addf %23, %26 : vector<256x128xbf16>
    %cst_17 = arith.constant 1.000980e-02 : bf16
    %28 = vector.broadcast %cst_17 : bf16 to vector<256x128xbf16>
    %29 = arith.mulf %28, %27 : vector<256x128xbf16>
    %30 = arith.maximumf %27, %29 : vector<256x128xbf16>
    %c0_18 = arith.constant 0 : index
    %c0_19 = arith.constant 0 : index
    %31 = vector.load %arg8[%c0_18, %c0_19] : memref<1x256xbf16, #tpu.memory_space<vmem>>, vector<1x256xbf16>
    %cst_20 = arith.constant dense<0.000000e+00> : vector<1x128xf32>
    %32 = tpu.matmul %31, %30, %cst_20 {dimension_numbers = #tpu.dot_dimension_numbers<[1], [0], [0], [1], [0, 0, 1, 1], [], []>} : vector<1x256xbf16>, vector<256x128xbf16>, vector<1x128xf32> -> vector<1x128xf32>
    %c0_21 = arith.constant 0 : index
    %c0_22 = arith.constant 0 : index
    %33 = vector.load %arg9[%c0_21, %c0_22] : memref<1x1xf32, #tpu.memory_space<vmem>>, vector<1x1xf32>
    %34 = vector.broadcast %33 : vector<1x1xf32> to vector<1x128xf32>
    %35 = arith.addf %32, %34 : vector<1x128xf32>
    %c0_23 = arith.constant 0 : index
    %c0_24 = arith.constant 0 : index
    %36 = vector.load %arg10[%c0_23, %c0_24] : memref<1x128xf32, #tpu.memory_space<vmem>>, vector<1x128xf32>
    tpu.vector_store %arg10[%c0_23, %c0_24], %35 {strides = array<i32>} : memref<1x128xf32, #tpu.memory_space<vmem>>, vector<1x128xf32>,
    return
  }
  func.func @transform_0(%arg0: i32) -> (i32, i32) {
    %c0_i32 = arith.constant 0 : i32
    %c0_i32_0 = arith.constant 0 : i32
    return %c0_i32, %arg0 : i32, i32
  }
  func.func @transform_1(%arg0: i32) -> (i32, i32) {
    %c0_i32 = arith.constant 0 : i32
    %c0_i32_0 = arith.constant 0 : i32
    %c0_i32_1 = arith.constant 0 : i32
    return %c0_i32, %c0_i32_0 : i32, i32
  }
  func.func @transform_2(%arg0: i32) -> (i32, i32) {
    %c0_i32 = arith.constant 0 : i32
    %c0_i32_0 = arith.constant 0 : i32
    %c0_i32_1 = arith.constant 0 : i32
    return %c0_i32, %c0_i32_0 : i32, i32
  }
  func.func @transform_3(%arg0: i32) -> (i32, i32) {
    %c0_i32 = arith.constant 0 : i32
    %c0_i32_0 = arith.constant 0 : i32
    %c0_i32_1 = arith.constant 0 : i32
    return %c0_i32, %c0_i32_0 : i32, i32
  }
  func.func @transform_4(%arg0: i32) -> (i32, i32) {
    %c0_i32 = arith.constant 0 : i32
    %c0_i32_0 = arith.constant 0 : i32
    %c0_i32_1 = arith.constant 0 : i32
    return %c0_i32, %c0_i32_0 : i32, i32
  }
  func.func @transform_5(%arg0: i32) -> (i32, i32) {
    %c0_i32 = arith.constant 0 : i32
    %c0_i32_0 = arith.constant 0 : i32
    %c0_i32_1 = arith.constant 0 : i32
    return %c0_i32, %c0_i32_0 : i32, i32
  }
  func.func @transform_6(%arg0: i32) -> (i32, i32) {
    %c0_i32 = arith.constant 0 : i32
    %c0_i32_0 = arith.constant 0 : i32
    %c0_i32_1 = arith.constant 0 : i32
    return %c0_i32, %c0_i32_0 : i32, i32
  }
  func.func @transform_7(%arg0: i32) -> (i32, i32) {
    %c0_i32 = arith.constant 0 : i32
    %c0_i32_0 = arith.constant 0 : i32
    %c0_i32_1 = arith.constant 0 : i32
    return %c0_i32, %c0_i32_0 : i32, i32
  }
  func.func @transform_8(%arg0: i32) -> (i32, i32) {
    %c0_i32 = arith.constant 0 : i32
    %c0_i32_0 = arith.constant 0 : i32
    %c0_i32_1 = arith.constant 0 : i32
    return %c0_i32, %c0_i32_0 : i32, i32
  }
  func.func @transform_9(%arg0: i32) -> (i32, i32) {
    %c0_i32 = arith.constant 0 : i32
    %c0_i32_0 = arith.constant 0 : i32
    return %c0_i32, %arg0 : i32, i32
  }
}

</mosaic_0001>

<bundles_post_ra>
// kernel: e2_forward.1
= control target key start
LH: loop header
LB: loop body
LE: loop exit
PB: predicated region body
PF: predicated region fallthrough
CT: control target
= control target key end

     0   :  { %s5231_s0 = inlined_call_operand.vmem [shape: bf16[128,384], index: 0, kind: input, shape index: {}]   ;;  %s5232_s1 = inlined_call_operand.vmem [shape: bf16[256,128], index: 1, kind: input, shape index: {}]   ;;  %s5233_s2 = inlined_call_operand.vmem [shape: f32[256,1], index: 2, kind: input, shape index: {}]   ;;  %s5234_s3 = inlined_call_operand.vmem [shape: bf16[512,256], index: 3, kind: input, shape index: {}]   ;;  %s5235_s4 = inlined_call_operand.vmem [shape: f32[512,1], index: 4, kind: input, shape index: {}]   ;;  %s5236_s5 = inlined_call_operand.vmem [shape: bf16[256,512], index: 5, kind: input, shape index: {}]   ;;  %s5237_s6 = inlined_call_operand.vmem [shape: f32[256,1], index: 6, kind: input, shape index: {}]   ;;  %s5238_s7 = inlined_call_operand.vmem [shape: bf16[1,256], index: 7, kind: input, shape index: {}]   ;;  %s5239_s8 = inlined_call_operand.<no memory space> [shape: f32[1,1], index: 8, kind: input, shape index: {}]   ;;  %s5240_s9 = inlined_call_operand.vmem [shape: f32[1,384], index: 9, kind: output, shape index: {}]  }
   0x1   :  { %v14_v0 = vstv %s5239_s8 }
   0x2   :  { %15 = vst [vmem:[#allocation2] sm:$0x1] %v14_v0 }
   0x3   :  { %s3870_s11 = smov 0   ;;  %s3872_s12 = smov 0  }
   0x4   :  { %s3874_s13 = smov 0  }
   0x5 LB: > { %s3066_s8 = sadd.s32 4294967295, %s3813_s13   ;;  %s3887_s14 = sadd.s32 1, %s3813_s13   ;;  %s3813_s13 = sphi %s3874_s13, %s5248_s13   ;;  %s3809_s12 = sphi %s3872_s12, %s5247_s12   ;;  %s3805_s11 = sphi %s3870_s11, %s5246_s11  }
   0x6   : > { %s25_s15 = ssub.s32 %s3813_s13, %s3887_s14  ;;  %s28_s16 = sadd.s32 1, %s3809_s12 }
   0x7   : > { %p26_p0 = scmp.eq.s32.totalorder %s25_s15, 0  ;;  %p35_p1 = scmp.ne.s32.totalorder %s3809_s12, %s3805_s11 }
   0x8   : > { %p36_p2 = scmp.eq.s32.totalorder %s3813_s13, 0  ;;  %p3069_p4 = scmp.ge.s32.totalorder %s3813_s13, 3 }
   0x9   : > { %s3896_s17 = scalar_select %p26_p0, %s3809_s12, %s28_s16  }
   0xa   : > { %p37_p3 = por %p36_p2, %p35_p1  ;;  %279 = sbr.rel (%p3069_p4) target bundleno = 29 (0x1d), region = 48 }
   0xf   : > { %282 = sbr.rel (!%p37_p3) target bundleno = 29 (0x1d), region = 52  ;;  %s284_s18 = sand.u32 (%p37_p3), 1, %s3809_s12  }
  0x10   : > { %s3071_s19 = sshll.u32 (%p37_p3), %s3813_s13, 2  ;;  %s3070_s20 = sshll.u32 (%p37_p3), %s284_s18, 6 }
  0x11   : > { %s3904_s23 = scalar_lea.vmem (%p37_p3), %s5231_s0, %s3071_s19  ;;  %s286_s24 = scalar_lea.vmem (%p37_p3), [#allocation3], %s3070_s20 }
  0x12   : > { %v305_v1 = vld [vmem:[%s3904_s23] sm:$0xf] (%p37_p3)  ;;  %v307_v2 = vld [vmem:[%s3904_s23 + $0xc] sm:$0xf] (%p37_p3)  ;;  %v309_v3 = vld [vmem:[%s3904_s23 + $0x18] sm:$0xf] (%p37_p3) }
  0x13   : > { %306 = vst [vmem:[%s286_s24] sm:$0xf] (%p37_p3), %v305_v1  ;;  %308 = vst [vmem:[%s286_s24 + $0x4] sm:$0xf] (%p37_p3), %v307_v2  ;;  %v311_v4 = vld [vmem:[%s3904_s23 + $0x24] sm:$0xf] (%p37_p3) }
  0x14   : > { %v313_v5 = vld [vmem:[%s3904_s23 + $0x30] sm:$0xf]  ;;  %310 = vst [vmem:[%s286_s24 + $0x8] sm:$0xf] %v309_v3  ;;  %312 = vst [vmem:[%s286_s24 + $0xc] sm:$0xf] %v311_v4 }
  0x15   : > { %314 = vst [vmem:[%s286_s24 + $0x10] sm:$0xf] %v313_v5  ;;  %v315_v6 = vld [vmem:[%s3904_s23 + $0x3c] sm:$0xf]  ;;  %v317_v7 = vld [vmem:[%s3904_s23 + $0x48] sm:$0xf] }
  0x16   : > { %v319_v8 = vld [vmem:[%s3904_s23 + $0x54] sm:$0xf]  ;;  %316 = vst [vmem:[%s286_s24 + $0x14] sm:$0xf] %v315_v6  ;;  %318 = vst [vmem:[%s286_s24 + $0x18] sm:$0xf] %v317_v7 }
  0x17   : > { %320 = vst [vmem:[%s286_s24 + $0x1c] sm:$0xf] %v319_v8  ;;  %v321_v9 = vld [vmem:[%s3904_s23 + $0x60] sm:$0xf]  ;;  %v323_v10 = vld [vmem:[%s3904_s23 + $0x6c] sm:$0xf] }
  0x18   : > { %v325_v11 = vld [vmem:[%s3904_s23 + $0x78] sm:$0xf]  ;;  %322 = vst [vmem:[%s286_s24 + $0x20] sm:$0xf] %v321_v9  ;;  %324 = vst [vmem:[%s286_s24 + $0x24] sm:$0xf] %v323_v10 }
  0x19   : > { %326 = vst [vmem:[%s286_s24 + $0x28] sm:$0xf] %v325_v11  ;;  %v327_v12 = vld [vmem:[%s3904_s23 + $0x84] sm:$0xf]  ;;  %v329_v13 = vld [vmem:[%s3904_s23 + $0x90] sm:$0xf] }
  0x1a   : > { %v331_v14 = vld [vmem:[%s3904_s23 + $0x9c] sm:$0xf]  ;;  %328 = vst [vmem:[%s286_s24 + $0x2c] sm:$0xf] %v327_v12  ;;  %330 = vst [vmem:[%s286_s24 + $0x30] sm:$0xf] %v329_v13 }
  0x1b   : > { %332 = vst [vmem:[%s286_s24 + $0x34] sm:$0xf] %v331_v14  ;;  %v333_v15 = vld [vmem:[%s3904_s23 + $0xa8] sm:$0xf]  ;;  %v335_v16 = vld [vmem:[%s3904_s23 + $0xb4] sm:$0xf] }
  0x1c   : > { %334 = vst [vmem:[%s286_s24 + $0x38] sm:$0xf] %v333_v15  ;;  %336 = vst [vmem:[%s286_s24 + $0x3c] sm:$0xf] %v335_v16 }
  0x1d PF: > { %p3072_p5 = scmp.ge.s32.totalorder %s3813_s13, 1  ;;  %p391_p6 = scmp.lt.s32.totalorder %s3813_s13, 4 }
  0x1f   : > { %p392_p7 = pnand %p3072_p5, %p391_p6 }
  0x20   : > { %s398_s25 = sand.u32 (!%p392_p7), 1, %s3805_s11   ;;  %p431_p8 = scmp.lt.s32.totalorder (!%p392_p7), %s3066_s8, 2 }
  0x21   : > { %395 = sbr.rel (%p392_p7) target bundleno = 1414 (0x586), region = 93  ;;  %s3073_s15 = sshll.u32 (!%p392_p7), %s398_s25, 6 }
  0x22   : > { %s3952_s26 = scalar_lea.vmem (!%p392_p7), [#allocation3], %s3073_s15 }
  0x26   : > { %v819_v17 = vld [vmem:[%s5233_s2 + $0x70] sm:$0xff]  ;;  %v820_v18 = vld [vmem:[%s5233_s2 + $0x78] sm:$0xff]  ;;  %v817_v19 = vld [vmem:[%s5233_s2 + $0x60] sm:$0xff]  ;;  %v3815_v20 = vmov 0   ;;  %s5250_s8 = smov (!%p431_p8, %s3066_s8), 2 }
  0x27   : > { %3573 = vset.pattern.permute.xlu0 %v3815_v20  ;;  %v844_v21 = vpack.c.bf16 %v820_v18, %v819_v17  ;;  %v818_v22 = vld [vmem:[%s5233_s2 + $0x68] sm:$0xff]  ;;  %3574 = vset.pattern.permute.xlu1 %v3815_v20  ;;  %v811_v23 = vld [vmem:[%s5233_s2 + $0x30] sm:$0xff]  ;;  %v812_v24 = vld [vmem:[%s5233_s2 + $0x38] sm:$0xff]  ;;  %s433_s18 = scalar_lea.vmem %s5240_s9, %s5250_s8 }
  0x28   : > { %v815_v25 = vld [vmem:[%s5233_s2 + $0x50] sm:$0xff]  ;;  %v816_v26 = vld [vmem:[%s5233_s2 + $0x58] sm:$0xff]  ;;  %1365 = vmatprep.subr.bf16.mxu1 %v3815_v20  ;;  %v843_v28 = vpack.c.bf16 %v818_v22, %v817_v19  ;;  %v840_v33 = vpack.c.bf16 %v812_v24, %v811_v23  ;;  %v813_v35 = vld [vmem:[%s5233_s2 + $0x40] sm:$0xff] }
  0x29   : > { %v3575_v27 = vld [vmem:[%s3952_s26 + $0x38] sm:$0xff]   ;;  %890 = vperm.xlu0 %3573, %v844_v21   ;;  %v842_v29 = vpack.c.bf16 %v816_v26, %v815_v25  ;;  %v3576_v30 = vld [vmem:[%s3952_s26 + $0x30] sm:$0xff]   ;;  %v3577_v32 = vld [vmem:[%s3952_s26 + $0x28] sm:$0xff]  }
  0x2a   : > { %3499 = vmatprep.subr.bf16.mxu0 %v3575_v27  ;;  %v807_v31 = vld [vmem:[%s5233_s2 + $0x10] sm:$0xff]  ;;  %v808_v34 = vld [vmem:[%s5233_s2 + $0x18] sm:$0xff]  ;;  %v814_v36 = vld [vmem:[%s5233_s2 + $0x48] sm:$0xff] }
  0x2b   : > { %880 = vperm.xlu1 %3574, %v842_v29   ;;  %3500 = vmatpush3.bf16.msra.mxu0 %v3575_v27  ;;  %v841_v37 = vpack.c.bf16 %v814_v36, %v813_v35  ;;  %v809_v38 = vld [vmem:[%s5233_s2 + $0x20] sm:$0xff]  ;;  %v838_v40 = vpack.c.bf16 %v808_v34, %v807_v31  ;;  %v835_v41 = vld [vmem:[%s5233_s2 + $0xf0] sm:$0xff]  ;;  %v810_v42 = vld [vmem:[%s5233_s2 + $0x28] sm:$0xff] }
  0x2c   : > { %3501 = vmatprep.subr.bf16.mxu0 %v3576_v30  ;;  %v3578_v39 = vld [vmem:[%s3952_s26 + $0x20] sm:$0xff]   ;;  %v836_v43 = vld [vmem:[%s5233_s2 + $0xf8] sm:$0xff]  ;;  %v839_v44 = vpack.c.bf16 %v810_v42, %v809_v38  ;;  %v831_v49 = vld [vmem:[%s5233_s2 + $0xd0] sm:$0xff] }
  0x2d   : > { %885 = vperm.xlu0 %3573, %v843_v28   ;;  %v805_v45 = vld [vmem:[%s5233_s2] sm:$0xff]  ;;  %v806_v46 = vld [vmem:[%s5233_s2 + $0x8] sm:$0xff]  ;;  %v852_v48 = vpack.c.bf16 %v836_v43, %v835_v41  ;;  %v832_v50 = vld [vmem:[%s5233_s2 + $0xd8] sm:$0xff] }
  0x2e   : > { %v3579_v47 = vld [vmem:[%s3952_s26 + $0x18] sm:$0xff]   ;;  %v837_v51 = vpack.c.bf16 %v806_v46, %v805_v45  ;;  %v834_v53 = vld [vmem:[%s5233_s2 + $0xe8] sm:$0xff]  ;;  %v3580_v55 = vld [vmem:[%s3952_s26 + $0x10] sm:$0xff]   ;;  %v850_v56 = vpack.c.bf16 %v832_v50, %v831_v49 }
  0x2f   : > { %3502 = vmatpush3.bf16.msra.mxu0 %v3576_v30  ;;  %875 = vperm.xlu1 %3574, %v841_v37   ;;  %v833_v52 = vld [vmem:[%s5233_s2 + $0xe0] sm:$0xff]  ;;  %v827_v57 = vld [vmem:[%s5233_s2 + $0xb0] sm:$0xff]  ;;  %v828_v58 = vld [vmem:[%s5233_s2 + $0xb8] sm:$0xff] }
  0x30   : > { %3503 = vmatprep.subr.bf16.mxu0 %v3577_v32  ;;  %v3583_v54 = vld [vmem:[%s5232_s1] sm:$0xff]   ;;  %v851_v59 = vpack.c.bf16 %v834_v53, %v833_v52  ;;  %v830_v61 = vld [vmem:[%s5233_s2 + $0xc8] sm:$0xff]  ;;  %v848_v63 = vpack.c.bf16 %v828_v58, %v827_v57  ;;  %v823_v0 = vld [vmem:[%s5233_s2 + $0x90] sm:$0xff] }
  0x31   : > { %870 = vperm.xlu0 %3573, %v840_v33   ;;  %3515 = vmatprep.mubr.bf16.mxu0 %v3583_v54  ;;  %v829_v60 = vld [vmem:[%s5233_s2 + $0xc0] sm:$0xff]  ;;  %v3581_v62 = vld [vmem:[%s3952_s26 + $0x8] sm:$0xff]   ;;  %v824_v1 = vld [vmem:[%s5233_s2 + $0x98] sm:$0xff] }
  0x32   : > { %v849_v2 = vpack.c.bf16 %v830_v61, %v829_v60  ;;  %v825_v3 = vld [vmem:[%s5233_s2 + $0xa0] sm:$0xff]  ;;  %v826_v4 = vld [vmem:[%s5233_s2 + $0xa8] sm:$0xff]  ;;  %v846_v6 = vpack.c.bf16 %v824_v1, %v823_v0  ;;  %v1716_v7 = vld [vmem:[%s5235_s4 + $0xf0] sm:$0xff] }
  0x33   : > { %3504 = vmatpush3.bf16.msra.mxu0 %v3577_v32  ;;  %865 = vperm.xlu1 %3574, %v839_v44   ;;  %v3582_v5 = vld [vmem:[%s3952_s26] sm:$0xff]   ;;  %v1717_v8 = vld [vmem:[%s5235_s4 + $0xf8] sm:$0xff]  ;;  %v847_v9 = vpack.c.bf16 %v826_v4, %v825_v3  ;;  %v1700_v17 = vld [vmem:[%s5235_s4 + $0x70] sm:$0xff] }
  0x34   : > { %3505 = vmatprep.subr.bf16.mxu0 %v3578_v39  ;;  %v821_v10 = vld [vmem:[%s5233_s2 + $0x80] sm:$0xff]  ;;  %v822_v11 = vld [vmem:[%s5233_s2 + $0x88] sm:$0xff]  ;;  %v1765_v12 = vpack.c.bf16 %v1717_v8, %v1716_v7  ;;  %v1701_v18 = vld [vmem:[%s5235_s4 + $0x78] sm:$0xff] }
  0x35   : > { %860 = vperm.xlu0 %3573, %v838_v40   ;;  %v1714_v13 = vld [vmem:[%s5235_s4 + $0xe0] sm:$0xff]  ;;  %v1715_v14 = vld [vmem:[%s5235_s4 + $0xe8] sm:$0xff]  ;;  %v845_v15 = vpack.c.bf16 %v822_v11, %v821_v10  ;;  %v3585_v19 = vld [vmem:[%s5232_s1 + $0x10] sm:$0xff]   ;;  %v1757_v24 = vpack.c.bf16 %v1701_v18, %v1700_v17 }
  0x36   : > { %v3584_v16 = vld [vmem:[%s5232_s1 + $0x8] sm:$0xff]   ;;  %v1764_v21 = vpack.c.bf16 %v1715_v14, %v1714_v13  ;;  %v1712_v22 = vld [vmem:[%s5235_s4 + $0xd0] sm:$0xff]  ;;  %v1713_v23 = vld [vmem:[%s5235_s4 + $0xd8] sm:$0xff] }
  0x37   : > { %3506 = vmatpush3.bf16.msra.mxu0 %v3578_v39  ;;  %855 = vperm.xlu1 %3574, %v837_v51   ;;  %v1698_v25 = vld [vmem:[%s5235_s4 + $0x60] sm:$0xff]  ;;  %v1699_v26 = vld [vmem:[%s5235_s4 + $0x68] sm:$0xff]  ;;  %v3586_v27 = vld [vmem:[%s5232_s1 + $0x18] sm:$0xff]   ;;  %v1763_v28 = vpack.c.bf16 %v1713_v23, %v1712_v22 }
  0x38   : > { %3507 = vmatprep.subr.bf16.mxu0 %v3579_v47  ;;  %v1710_v29 = vld [vmem:[%s5235_s4 + $0xc0] sm:$0xff]  ;;  %v1711_v30 = vld [vmem:[%s5235_s4 + $0xc8] sm:$0xff]  ;;  %v1756_v31 = vpack.c.bf16 %v1699_v26, %v1698_v25  ;;  %v1696_v32 = vld [vmem:[%s5235_s4 + $0x50] sm:$0xff] }
  0x39   : > { %930 = vperm.xlu0 %3573, %v852_v48   ;;  %v1697_v33 = vld [vmem:[%s5235_s4 + $0x58] sm:$0xff]  ;;  %v3587_v34 = vld [vmem:[%s5232_s1 + $0x20] sm:$0xff]   ;;  %v1762_v35 = vpack.c.bf16 %v1711_v30, %v1710_v29  ;;  %v1708_v36 = vld [vmem:[%s5235_s4 + $0xb0] sm:$0xff] }
  0x3a   : > { %v1709_v37 = vld [vmem:[%s5235_s4 + $0xb8] sm:$0xff]  ;;  %v1755_v38 = vpack.c.bf16 %v1697_v33, %v1696_v32  ;;  %v1694_v39 = vld [vmem:[%s5235_s4 + $0x40] sm:$0xff]  ;;  %v1695_v40 = vld [vmem:[%s5235_s4 + $0x48] sm:$0xff] }
  0x3b   : > { %3508 = vmatpush3.bf16.msra.mxu0 %v3579_v47  ;;  %925 = vperm.xlu1 %3574, %v851_v59   ;;  %v3588_v41 = vld [vmem:[%s5232_s1 + $0x28] sm:$0xff]   ;;  %v1761_v42 = vpack.c.bf16 %v1709_v37, %v1708_v36  ;;  %v1706_v43 = vld [vmem:[%s5235_s4 + $0xa0] sm:$0xff]  ;;  %v1754_v45 = vpack.c.bf16 %v1695_v40, %v1694_v39  ;;  %v1692_v46 = vld [vmem:[%s5235_s4 + $0x30] sm:$0xff] }
  0x3c   : > { %3509 = vmatprep.subr.bf16.mxu0 %v3580_v55  ;;  %v1707_v44 = vld [vmem:[%s5235_s4 + $0xa8] sm:$0xff]  ;;  %v1693_v47 = vld [vmem:[%s5235_s4 + $0x38] sm:$0xff]  ;;  %v3589_v48 = vld [vmem:[%s5232_s1 + $0x30] sm:$0xff]  }
  0x3d   : > { %920 = vperm.xlu0 %3573, %v850_v56   ;;  %v1760_v49 = vpack.c.bf16 %v1707_v44, %v1706_v43  ;;  %v1704_v50 = vld [vmem:[%s5235_s4 + $0x90] sm:$0xff]  ;;  %v1705_v51 = vld [vmem:[%s5235_s4 + $0x98] sm:$0xff]  ;;  %v1753_v52 = vpack.c.bf16 %v1693_v47, %v1692_v46  ;;  %v1690_v53 = vld [vmem:[%s5235_s4 + $0x20] sm:$0xff] }
  0x3e   : > { %v1691_v54 = vld [vmem:[%s5235_s4 + $0x28] sm:$0xff]  ;;  %v1702_v56 = vld [vmem:[%s5235_s4 + $0x80] sm:$0xff]  ;;  %v3590_v59 = vld [vmem:[%s5232_s1 + $0x38] sm:$0xff]  }
  0x3f   : > { %3510 = vmatpush3.bf16.msra.mxu0 %v3580_v55  ;;  %915 = vperm.xlu1 %3574, %v849_v2   ;;  %v1759_v55 = vpack.c.bf16 %v1705_v51, %v1704_v50  ;;  %v1703_v57 = vld [vmem:[%s5235_s4 + $0x88] sm:$0xff]  ;;  %v1752_v58 = vpack.c.bf16 %v1691_v54, %v1690_v53  ;;  %v1688_v60 = vld [vmem:[%s5235_s4 + $0x10] sm:$0xff]  ;;  %v1689_v61 = vld [vmem:[%s5235_s4 + $0x18] sm:$0xff] }
  0x40   : > { %3511 = vmatprep.subr.bf16.mxu0 %v3581_v62  ;;  %v1748_v0 = vld [vmem:[%s5235_s4 + $0x1f0] sm:$0xff]  ;;  %v1749_v1 = vld [vmem:[%s5235_s4 + $0x1f8] sm:$0xff]  ;;  %v1751_v2 = vpack.c.bf16 %v1689_v61, %v1688_v60  ;;  %v1686_v3 = vld [vmem:[%s5235_s4] sm:$0xff] }
  0x41   : > { %910 = vperm.xlu0 %3573, %v848_v63   ;;  %v1758_v63 = vpack.c.bf16 %v1703_v57, %v1702_v56  ;;  %v1687_v4 = vld [vmem:[%s5235_s4 + $0x8] sm:$0xff]  ;;  %v1732_v10 = vld [vmem:[%s5235_s4 + $0x170] sm:$0xff]  ;;  %v1733_v11 = vld [vmem:[%s5235_s4 + $0x178] sm:$0xff] }
  0x42   : > { %v1747_v7 = vld [vmem:[%s5235_s4 + $0x1e8] sm:$0xff]  ;;  %v1750_v8 = vpack.c.bf16 %v1687_v4, %v1686_v3  ;;  %v1744_v13 = vld [vmem:[%s5235_s4 + $0x1d0] sm:$0xff]  ;;  %v1745_v14 = vld [vmem:[%s5235_s4 + $0x1d8] sm:$0xff]  ;;  %v1773_v18 = vpack.c.bf16 %v1733_v11, %v1732_v10 }
  0x43   : > { %3512 = vmatpush3.bf16.msra.mxu0 %v3581_v62  ;;  %905 = vperm.xlu1 %3574, %v847_v9   ;;  %v3591_v62 = vld [vmem:[%s5232_s1 + $0x40] sm:$0xff]   ;;  %v3592_v9 = vld [vmem:[%s5232_s1 + $0x48] sm:$0xff]   ;;  %v3594_v22 = vld [vmem:[%s5232_s1 + $0x58] sm:$0xff]   ;;  %v1779_v23 = vpack.c.bf16 %v1745_v14, %v1744_v13 }
  0x44   : > { %3513 = vmatprep.subr.bf16.mxu0 %v3582_v5  ;;  %v1731_v17 = vld [vmem:[%s5235_s4 + $0x168] sm:$0xff]  ;;  %v1729_v25 = vld [vmem:[%s5235_s4 + $0x158] sm:$0xff]  ;;  %v3595_v26 = vld [vmem:[%s5232_s1 + $0x60] sm:$0xff]  }
  0x45   : > { %900 = vperm.xlu0 %3573, %v846_v6   ;;  %v1746_v6 = vld [vmem:[%s5235_s4 + $0x1e0] sm:$0xff]  ;;  %v1741_v29 = vld [vmem:[%s5235_s4 + $0x1b8] sm:$0xff]  ;;  %v1727_v32 = vld [vmem:[%s5235_s4 + $0x148] sm:$0xff] }
  0x46   : > { %v3596_v36 = vld [vmem:[%s5232_s1 + $0x68] sm:$0xff]   ;;  %v1725_v39 = vld [vmem:[%s5235_s4 + $0x138] sm:$0xff]  ;;  %v3597_v40 = vld [vmem:[%s5232_s1 + $0x70] sm:$0xff]  }
  0x47   : > { %3514 = vmatpush3.bf16.msra.mxu0 %v3582_v5  ;;  %895 = vperm.xlu1 %3574, %v845_v15   ;;  %v1781_v5 = vpack.c.bf16 %v1749_v1, %v1748_v0  ;;  %v1780_v15 = vpack.c.bf16 %v1747_v7, %v1746_v6  ;;  %v1737_v43 = vld [vmem:[%s5235_s4 + $0x198] sm:$0xff]  ;;  %v1723_v46 = vld [vmem:[%s5235_s4 + $0x128] sm:$0xff]  ;;  %v2788_v61 = vld [vmem:[%s5237_s6 + $0xe0] sm:$0xff] }
  0x48   : > { %v3598_v50 = vld [vmem:[%s5232_s1 + $0x78] sm:$0xff]   ;;  %v2774_v0 = vld [vmem:[%s5237_s6 + $0x70] sm:$0xff]  ;;  %v2772_v6 = vld [vmem:[%s5237_s6 + $0x60] sm:$0xff] }
  0x49   : > { %1859 = vperm.xlu0 %3573, %v1765_v12   ;;  %v3593_v12 = vld [vmem:[%s5232_s1 + $0x50] sm:$0xff]   ;;  %v1721_v53 = vld [vmem:[%s5235_s4 + $0x118] sm:$0xff]  ;;  %v2773_v7 = vld [vmem:[%s5237_s6 + $0x68] sm:$0xff] }
  0x4a   : > { %3516 = vmatmul.mubr.bf16.vlgmr.msra.gmra.mxu0 %v3584_v16  ;;  %v1730_v16 = vld [vmem:[%s5235_s4 + $0x160] sm:$0xff]  ;;  %v2791_v56 = vld [vmem:[%s5237_s6 + $0xf8] sm:$0xff]  ;;  %v2786_v3 = vld [vmem:[%s5237_s6 + $0xd0] sm:$0xff]  ;;  %v2798_v14 = vpack.c.bf16 %v2773_v7, %v2772_v6 }
  0x4b   : > { %3519 = vmatprep.mubr.bf16.mxu0 %v3585_v19  ;;  %1819 = vperm.xlu1 %3574, %v1757_v24   ;;  %v1742_v19 = vld [vmem:[%s5235_s4 + $0x1c0] sm:$0xff]  ;;  %v1728_v24 = vld [vmem:[%s5235_s4 + $0x150] sm:$0xff]  ;;  %v2775_v1 = vld [vmem:[%s5237_s6 + $0x78] sm:$0xff] }
  0x4c   : > { %v1771_v33 = vpack.c.bf16 %v1729_v25, %v1728_v24  ;;  %v2787_v4 = vld [vmem:[%s5237_s6 + $0xd8] sm:$0xff]  ;;  %v2785_v10 = vld [vmem:[%s5237_s6 + $0xc8] sm:$0xff] }
  0x4d   : > { %1854 = vperm.xlu0 %3573, %v1764_v21   ;;  %v1743_v21 = vld [vmem:[%s5235_s4 + $0x1c8] sm:$0xff]  ;;  %v2805_v11 = vpack.c.bf16 %v2787_v4, %v2786_v3  ;;  %v2771_v13 = vld [vmem:[%s5237_s6 + $0x58] sm:$0xff] }
  0x4e   : > { %v1778_v30 = vpack.c.bf16 %v1743_v21, %v1742_v19  ;;  %v2769_v21 = vld [vmem:[%s5237_s6 + $0x48] sm:$0xff] }
  0x4f   : > { %1814 = vperm.xlu1 %3574, %v1756_v31   ;;  %v1726_v31 = vld [vmem:[%s5235_s4 + $0x140] sm:$0xff]  ;;  %v2781_v24 = vld [vmem:[%s5237_s6 + $0xa8] sm:$0xff] }
  0x51   : > { %1849 = vperm.xlu0 %3573, %v1763_v28   ;;  %v1740_v28 = vld [vmem:[%s5235_s4 + $0x1b0] sm:$0xff] }
  0x52   : > { %3520 = vmatmul.mubr.bf16.gmra.mxu0 %v3586_v27  ;;  %v1772_v27 = vpack.c.bf16 %v1731_v17, %v1730_v16  ;;  %v1777_v37 = vpack.c.bf16 %v1741_v29, %v1740_v28  ;;  %v2783_v16 = vld [vmem:[%s5237_s6 + $0xb8] sm:$0xff]  ;;  %v2778_v29 = vld [vmem:[%s5237_s6 + $0x90] sm:$0xff] }
  0x53   : > { %3523 = vmatprep.mubr.bf16.mxu0 %v3587_v34  ;;  %1809 = vperm.xlu1 %3574, %v1755_v38   ;;  %v1738_v34 = vld [vmem:[%s5235_s4 + $0x1a0] sm:$0xff]  ;;  %v1724_v38 = vld [vmem:[%s5235_s4 + $0x130] sm:$0xff] }
  0x54   : > { %v1769_v47 = vpack.c.bf16 %v1725_v39, %v1724_v38  ;;  %v2762_v38 = vld [vmem:[%s5237_s6 + $0x10] sm:$0xff]  ;;  %v2763_v39 = vld [vmem:[%s5237_s6 + $0x18] sm:$0xff] }
  0x55   : > { %1844 = vperm.xlu0 %3573, %v1762_v35   ;;  %v1739_v35 = vld [vmem:[%s5235_s4 + $0x1a8] sm:$0xff] }
  0x56   : > { %v1776_v44 = vpack.c.bf16 %v1739_v35, %v1738_v34  ;;  %v2776_v35 = vld [vmem:[%s5237_s6 + $0x80] sm:$0xff] }
  0x57   : > { %1804 = vperm.xlu1 %3574, %v1754_v45   ;;  %v1722_v45 = vld [vmem:[%s5235_s4 + $0x120] sm:$0xff] }
  0x58   : > { %v1768_v54 = vpack.c.bf16 %v1723_v46, %v1722_v45  ;;  %v3601_v46 = vld [vmem:[%s5234_s3 + $0x4] ss:$8 sps:$4 sm:$0xff]  }
  0x59   : > { %1839 = vperm.xlu0 %3573, %v1761_v42   ;;  %v1736_v42 = vld [vmem:[%s5235_s4 + $0x190] sm:$0xff]  ;;  %1397 = vmatprep.mubr.bf16.mxu1 %v3601_v46 }
  0x5a   : > { %3524 = vmatmul.mubr.bf16.gmra.mxu0 %v3588_v41  ;;  %v1770_v41 = vpack.c.bf16 %v1727_v32, %v1726_v31  ;;  %v1775_v51 = vpack.c.bf16 %v1737_v43, %v1736_v42  ;;  %v2764_v32 = vld [vmem:[%s5237_s6 + $0x20] sm:$0xff]  ;;  %v2761_v43 = vld [vmem:[%s5237_s6 + $0x8] sm:$0xff] }
  0x5b   : > { %3527 = vmatprep.mubr.bf16.mxu0 %v3589_v48  ;;  %1799 = vperm.xlu1 %3574, %v1753_v52   ;;  %v1734_v48 = vld [vmem:[%s5235_s4 + $0x180] sm:$0xff]  ;;  %v1720_v52 = vld [vmem:[%s5235_s4 + $0x110] sm:$0xff] }
  0x5c   : > { %v1767_v60 = vpack.c.bf16 %v1721_v53, %v1720_v52  ;;  %v2760_v42 = vld [vmem:[%s5237_s6] sm:$0xff] }
  0x5d   : > { %1834 = vperm.xlu0 %3573, %v1760_v49   ;;  %v1735_v49 = vld [vmem:[%s5235_s4 + $0x188] sm:$0xff]  ;;  %v2792_v45 = vpack.c.bf16 %v2761_v43, %v2760_v42 }
  0x5e   : > { %v1774_v57 = vpack.c.bf16 %v1735_v49, %v1734_v48 }
  0x5f   : > { %1794 = vperm.xlu1 %3574, %v1752_v58   ;;  %v1718_v58 = vld [vmem:[%s5235_s4 + $0x100] sm:$0xff] }
  0x61   : > { %1829 = vperm.xlu0 %3573, %v1759_v55   ;;  %v2790_v55 = vld [vmem:[%s5237_s6 + $0xf0] sm:$0xff] }
  0x62   : > { %3528 = vmatmul.mubr.bf16.gmra.mxu0 %v3590_v59  ;;  %v1719_v59 = vld [vmem:[%s5235_s4 + $0x108] sm:$0xff] }
  0x63   : > { %3531 = vmatprep.mubr.bf16.mxu0 %v3591_v62  ;;  %1789 = vperm.xlu1 %3574, %v1751_v2   ;;  %v2789_v62 = vld [vmem:[%s5237_s6 + $0xe8] sm:$0xff]  ;;  %v1766_v2 = vpack.c.bf16 %v1719_v59, %v1718_v58 }
  0x65   : > { %1824 = vperm.xlu0 %3573, %v1758_v63   ;;  %v2807_v63 = vpack.c.bf16 %v2791_v56, %v2790_v55 }
  0x67   : > { %1784 = vperm.xlu1 %3574, %v1750_v8   ;;  %v2799_v8 = vpack.c.bf16 %v2775_v1, %v2774_v0 }
  0x69   : > { %1939 = vperm.xlu0 %3573, %v1781_v5   ;;  %v2806_v5 = vpack.c.bf16 %v2789_v62, %v2788_v61 }
  0x6a   : > { %3532 = vmatmul.mubr.bf16.gmra.mxu0 %v3592_v9  ;;  %v2784_v9 = vld [vmem:[%s5237_s6 + $0xc0] sm:$0xff] }
  0x6b   : > { %3535 = vmatprep.mubr.bf16.mxu0 %v3593_v12  ;;  %1899 = vperm.xlu1 %3574, %v1773_v18   ;;  %v2770_v12 = vld [vmem:[%s5237_s6 + $0x50] sm:$0xff]  ;;  %v2804_v17 = vpack.c.bf16 %v2785_v10, %v2784_v9  ;;  %v2768_v18 = vld [vmem:[%s5237_s6 + $0x40] sm:$0xff] }
  0x6c   : > { %v2797_v19 = vpack.c.bf16 %v2771_v13, %v2770_v12  ;;  %v2796_v25 = vpack.c.bf16 %v2769_v21, %v2768_v18 }
  0x6d   : > { %1934 = vperm.xlu0 %3573, %v1780_v15   ;;  %v2782_v15 = vld [vmem:[%s5237_s6 + $0xb0] sm:$0xff] }
  0x6f   : > { %1894 = vperm.xlu1 %3574, %v1772_v27   ;;  %v2767_v27 = vld [vmem:[%s5237_s6 + $0x38] sm:$0xff] }
  0x71   : > { %1929 = vperm.xlu0 %3573, %v1779_v23   ;;  %v2780_v23 = vld [vmem:[%s5237_s6 + $0xa0] sm:$0xff] }
  0x72   : > { %3536 = vmatmul.mubr.bf16.gmra.mxu0 %v3594_v22  ;;  %v2803_v22 = vpack.c.bf16 %v2783_v16, %v2782_v15  ;;  %v2802_v28 = vpack.c.bf16 %v2781_v24, %v2780_v23 }
  0x73   : > { %3539 = vmatprep.mubr.bf16.mxu0 %v3595_v26  ;;  %1889 = vperm.xlu1 %3574, %v1771_v33   ;;  %v2766_v26 = vld [vmem:[%s5237_s6 + $0x30] sm:$0xff]  ;;  %v2765_v33 = vld [vmem:[%s5237_s6 + $0x28] sm:$0xff] }
  0x74   : > { %v2795_v31 = vpack.c.bf16 %v2767_v27, %v2766_v26 }
  0x75   : > { %1924 = vperm.xlu0 %3573, %v1778_v30   ;;  %v2779_v30 = vld [vmem:[%s5237_s6 + $0x98] sm:$0xff] }
  0x76   : > { %v2801_v34 = vpack.c.bf16 %v2779_v30, %v2778_v29 }
  0x77   : > { %1884 = vperm.xlu1 %3574, %v1770_v41   ;;  %v2793_v41 = vpack.c.bf16 %v2763_v39, %v2762_v38 }
  0x79   : > { %1919 = vperm.xlu0 %3573, %v1777_v37   ;;  %v2794_v37 = vpack.c.bf16 %v2765_v33, %v2764_v32 }
  0x7a   : > { %3540 = vmatmul.mubr.bf16.gmra.mxu0 %v3596_v36  ;;  %v2777_v36 = vld [vmem:[%s5237_s6 + $0x88] sm:$0xff] }
  0x7b   : > { %3543 = vmatprep.mubr.bf16.mxu0 %v3597_v40  ;;  %1879 = vperm.xlu1 %3574, %v1769_v47   ;;  %v2800_v40 = vpack.c.bf16 %v2777_v36, %v2776_v35 }
  0x7d   : > { %1914 = vperm.xlu0 %3573, %v1776_v44   ;;  %v2937_v44 = vld [vmem:[#allocation2] sm:$0x1] }
  0x7f   : > { %1874 = vperm.xlu1 %3574, %v1768_v54  }
  0x81   : > { %1909 = vperm.xlu0 %3573, %v1775_v51  }
  0x82   : > { %3544 = vmatmul.mubr.bf16.gmra.mxu0 %v3598_v50 }
  0x83   : > { %1869 = vperm.xlu1 %3574, %v1767_v60  }
  0x85   : > { %1904 = vperm.xlu0 %3573, %v1774_v57  }
  0x87   : > { %1864 = vperm.xlu1 %3574, %v1766_v2  }
  0x89   : > { %2885 = vperm.xlu0 %3573, %v2807_v63  }
  0x8b   : > { %2845 = vperm.xlu1 %3574, %v2799_v8  }
  0x8d   : > { %2880 = vperm.xlu0 %3573, %v2806_v5  }
  0x8f   : > { %2840 = vperm.xlu1 %3574, %v2798_v14  }
  0x91   : > { %2875 = vperm.xlu0 %3573, %v2805_v11  }
  0x93   : > { %2835 = vperm.xlu1 %3574, %v2797_v19  }
  0x95   : > { %2870 = vperm.xlu0 %3573, %v2804_v17  }
  0x97   : > { %2830 = vperm.xlu1 %3574, %v2796_v25  }
  0x99   : > { %2865 = vperm.xlu0 %3573, %v2803_v22  }
  0x9b   : > { %2825 = vperm.xlu1 %3574, %v2795_v31  }
  0x9d   : > { %2860 = vperm.xlu0 %3573, %v2802_v28  }
  0x9f   : > { %2820 = vperm.xlu1 %3574, %v2794_v37  }
  0xa1   : > { %2855 = vperm.xlu0 %3573, %v2801_v34  }
  0xa3   : > { %2815 = vperm.xlu1 %3574, %v2793_v41  }
  0xa4   : > { %v891_v60 = vpop.permute.xlu0 %890 }
  0xa5   : > { %2850 = vperm.xlu0 %3573, %v2800_v40  }
  0xa6   : > { %v881_v1 = vpop.permute.xlu1 %880 }
  0xa7   : > { %2810 = vperm.xlu1 %3574, %v2792_v45  }
  0xa8   : > { %v886_v5 = vpop.permute.xlu0 %885 }
  0xa9   : > { %2940 = vperm.xlu0 %3573, %v2937_v44  }
  0xaa   : > { %v876_v15 = vpop.permute.xlu1 %875 }
  0xac   : > { %v871_v23 = vpop.permute.xlu0 %870 }
  0xae   : > { %v866_v30 = vpop.permute.xlu1 %865 }
  0xb0   : > { %v861_v37 = vpop.permute.xlu0 %860 }
  0xb2   : > { %v856_v44 = vpop.permute.xlu1 %855 }
 0x10a   : > { %v4373_v47 = vpop.f32.mrf.mxu0 }
 0x10c   : > { %v4375_v48 = vpop.f32.mrf.mxu0 }
 0x10e   : > { %v3518_v49 = vpop.f32.mrf.mxu0 }
 0x10f   : > { %v790_v32 = vpack.c.bf16 %v3518_v49, %v4373_v47 }
 0x110   : > { %v4377_v50 = vpop.f32.mrf.mxu0 }
 0x111   : > { %v934_v39 = vadd.bf16 %v861_v37, %v790_v32  ;;  %v789_v40 = vpack.c.bf16 %v4377_v50, %v4375_v48  ;;  %v3608_v37 = vld [vmem:[%s5234_s3 + $0x34] ss:$8 sps:$4 sm:$0xff]  }
 0x112   : > { %v3521_v51 = vpop.f32.mrf.mxu0 }
 0x113   : > { %v950_v46 = vmul.bf16 1009007652, %v934_v39  ;;  %v933_v47 = vadd.bf16 %v856_v44, %v789_v40  ;;  %v3613_v40 = vld [vmem:[%s5234_s3 + $0x40] ss:$8 sps:$4 sm:$0xff]  }
 0x114   : > { %v678_v52 = vpop.f32.mrf.mxu0  ;;  %v3619_v44 = vld [vmem:[%s5234_s3 + $0x60] ss:$8 sps:$4 sm:$0xff]  }
 0x116   : > { %v3522_v53 = vpop.f32.mrf.mxu0 }
 0x117   : > { %v792_v17 = vpack.c.bf16 %v3522_v53, %v3521_v51  ;;  %v949_v53 = vmul.bf16 1009007652, %v933_v47 }
 0x118   : > { %v681_v54 = vpop.f32.mrf.mxu0 }
 0x119   : > { %v936_v25 = vadd.bf16 %v871_v23, %v792_v17  ;;  %v791_v26 = vpack.c.bf16 %v681_v54, %v678_v52  ;;  %v966_v54 = vmax.bf16 %v950_v46, %v934_v39  ;;  %v3611_v39 = vld [vmem:[%s5234_s3 + $0x44] ss:$8 sps:$4 sm:$0xff]   ;;  %v3622_v46 = vld [vmem:[%s5234_s3 + $0x70] ss:$8 sps:$4 sm:$0xff]  }
 0x11a   : > { %v3525_v55 = vpop.f32.mrf.mxu0 }
 0x11b   : > { %v952_v33 = vmul.bf16 1009007652, %v936_v25  ;;  %v935_v34 = vadd.bf16 %v866_v30, %v791_v26 }
 0x11c   : > { %v694_v56 = vpop.f32.mrf.mxu0 }
 0x11d   : > { %v951_v41 = vmul.bf16 1009007652, %v935_v34  ;;  %v968_v42 = vmax.bf16 %v952_v33, %v936_v25 }
 0x11e   : > { %v3526_v57 = vpop.f32.mrf.mxu0 }
 0x11f   : > { %v794_v2 = vpack.c.bf16 %v3526_v57, %v3525_v55  ;;  %v967_v49 = vmax.bf16 %v951_v41, %v935_v34  ;;  %v931_v55 = vpop.permute.xlu0 %930  ;;  %v3614_v41 = vld [vmem:[%s5234_s3 + $0x54] ss:$8 sps:$4 sm:$0xff]  }
 0x120   : > { %v697_v58 = vpop.f32.mrf.mxu0 }
 0x121   : > { %v938_v10 = vadd.bf16 %v881_v1, %v794_v2  ;;  %v793_v11 = vpack.c.bf16 %v697_v58, %v694_v56 }
 0x122   : > { %v3529_v59 = vpop.f32.mrf.mxu0 }
 0x123   : > { %v954_v18 = vmul.bf16 1009007652, %v938_v10  ;;  %v937_v19 = vadd.bf16 %v876_v15, %v793_v11 }
 0x124   : > { %v710_v61 = vpop.f32.mrf.mxu0 }
 0x125   : > { %v953_v27 = vmul.bf16 1009007652, %v937_v19  ;;  %v970_v28 = vmax.bf16 %v954_v18, %v938_v10 }
 0x126   : > { %v3530_v62 = vpop.f32.mrf.mxu0 }
 0x127   : > { %v796_v63 = vpack.c.bf16 %v3530_v62, %v3529_v59  ;;  %v969_v35 = vmax.bf16 %v953_v27, %v937_v19 }
 0x128   : > { %v713_v0 = vpop.f32.mrf.mxu0 }
 0x129   : > { %v940_v3 = vadd.bf16 %v891_v60, %v796_v63  ;;  %v795_v4 = vpack.c.bf16 %v713_v0, %v710_v61  ;;  %v965_v60 = vmax.bf16 %v949_v53, %v933_v47  ;;  %v926_v61 = vpop.permute.xlu1 %925  ;;  %v921_v0 = vpop.permute.xlu0 %920  ;;  %v3623_v47 = vld [vmem:[%s5234_s3 + $0x84] ss:$8 sps:$4 sm:$0xff]  }
 0x12a   : > { %v4379_v6 = vpop.f32.mrf.mxu0  ;;  %v3629_v53 = vld [vmem:[%s5234_s3 + $0xa4] ss:$8 sps:$4 sm:$0xff]  }
 0x12b   : > { %v939_v7 = vadd.bf16 %v886_v5, %v795_v4  ;;  %v956_v8 = vmul.bf16 1009007652, %v940_v3 }
 0x12c   : > { %v4381_v9 = vpop.f32.mrf.mxu0 }
 0x12d   : > { %v955_v12 = vmul.bf16 1009007652, %v939_v7  ;;  %v972_v13 = vmax.bf16 %v956_v8, %v940_v3  ;;  %v916_v5 = vpop.permute.xlu1 %915 }
 0x12e   : > { %v4383_v14 = vpop.f32.mrf.mxu0 }
 0x12f   : > { %1366 = vmatpush1.bf16.msra.mxu1 %v972_v13  ;;  %v971_v21 = vmax.bf16 %v955_v12, %v939_v7  ;;  %v911_v12 = vpop.permute.xlu0 %910 }
 0x130   : > { %v4385_v16 = vpop.f32.mrf.mxu0  ;;  %1367 = vmatprep.subr.bf16.mxu1 %v3815_v20 }
 0x131   : > { %v906_v19 = vpop.permute.xlu1 %905 }
 0x132   : > { %v4388_v22 = vpop.f32.mrf.mxu0 }
 0x133   : > { %1368 = vmatpush1.bf16.msra.mxu1 %v971_v21  ;;  %v798_v21 = vpack.c.bf16 %v4383_v14, %v4379_v6  ;;  %v901_v26 = vpop.permute.xlu0 %900 }
 0x134   : > { %v4390_v24 = vpop.f32.mrf.mxu0  ;;  %1369 = vmatprep.subr.bf16.mxu1 %v3815_v20 }
 0x135   : > { %v942_v27 = vadd.bf16 %v901_v26, %v798_v21  ;;  %v896_v30 = vpop.permute.xlu1 %895  ;;  %v3673_v21 = vld [vmem:[%s5234_s3 + $0x180] ss:$8 sps:$4 sm:$0xff]  }
 0x136   : > { %v4393_v29 = vpop.f32.mrf.mxu0 }
 0x137   : > { %1370 = vmatpush1.bf16.msra.mxu1 %v970_v28  ;;  %v800_v7 = vpack.c.bf16 %v4393_v29, %v4388_v22 }
 0x138   : > { %v4395_v31 = vpop.f32.mrf.mxu0  ;;  %1371 = vmatprep.subr.bf16.mxu1 %v3815_v20 }
 0x139   : > { %v944_v13 = vadd.bf16 %v911_v12, %v800_v7  ;;  %v799_v15 = vpack.c.bf16 %v4395_v31, %v4390_v24  ;;  %v797_v24 = vpack.c.bf16 %v4385_v16, %v4381_v9  ;;  %v958_v31 = vmul.bf16 1009007652, %v942_v27  ;;  %v3599_v9 = vld [vmem:[%s5234_s3] ss:$8 sps:$4 sm:$0xff]   ;;  %v3602_v16 = vld [vmem:[%s5234_s3 + $0x14] ss:$8 sps:$4 sm:$0xff]  }
 0x13a   : > { %v3541_v36 = vpop.f32.mrf.mxu0  ;;  %v3658_v7 = vld [vmem:[%s5234_s3 + $0x130] ss:$8 sps:$4 sm:$0xff]  }
 0x13b   : > { %1372 = vmatpush1.bf16.msra.mxu1 %v969_v35  ;;  %v960_v22 = vmul.bf16 1009007652, %v944_v13  ;;  %v943_v23 = vadd.bf16 %v906_v19, %v799_v15  ;;  %v941_v32 = vadd.bf16 %v896_v30, %v797_v24  ;;  %v974_v33 = vmax.bf16 %v958_v31, %v942_v27  ;;  %v3604_v35 = vld [vmem:[%s5234_s3 + $0x10] ss:$8 sps:$4 sm:$0xff]   ;;  %v3667_v15 = vld [vmem:[%s5234_s3 + $0x160] ss:$8 sps:$4 sm:$0xff]  }
 0x13c   : > { %v758_v38 = vpop.f32.mrf.mxu0  ;;  %1373 = vmatprep.subr.bf16.mxu1 %v3815_v20  ;;  %v3664_v12 = vld [vmem:[%s5234_s3 + $0x150] ss:$8 sps:$4 sm:$0xff]   ;;  %v3671_v19 = vld [vmem:[%s5234_s3 + $0x184] ss:$8 sps:$4 sm:$0xff]  }
 0x13d   : > { %v959_v28 = vmul.bf16 1009007652, %v943_v23  ;;  %v976_v29 = vmax.bf16 %v960_v22, %v944_v13  ;;  %v957_v14 = vmul.bf16 1009007652, %v941_v32  ;;  %v3665_v13 = vld [vmem:[%s5234_s3 + $0x164] ss:$8 sps:$4 sm:$0xff]  }
 0x13e   : > { %v3542_v43 = vpop.f32.mrf.mxu0  ;;  %v3674_v22 = vld [vmem:[%s5234_s3 + $0x194] ss:$8 sps:$4 sm:$0xff]   ;;  %v3676_v27 = vld [vmem:[%s5234_s3 + $0x190] ss:$8 sps:$4 sm:$0xff]  }
 0x13f   : > { %1374 = vmatpush1.bf16.msra.mxu1 %v968_v42  ;;  %v802_v57 = vpack.c.bf16 %v3542_v43, %v3541_v36  ;;  %v975_v6 = vmax.bf16 %v959_v28, %v943_v23  ;;  %v973_v34 = vmax.bf16 %v957_v14, %v941_v32  ;;  %v3607_v36 = vld [vmem:[%s5234_s3 + $0x20] ss:$8 sps:$4 sm:$0xff]   ;;  %v3616_v42 = vld [vmem:[%s5234_s3 + $0x50] ss:$8 sps:$4 sm:$0xff]   ;;  %v3617_v43 = vld [vmem:[%s5234_s3 + $0x64] ss:$8 sps:$4 sm:$0xff]  }
 0x140   : > { %v761_v45 = vpop.f32.mrf.mxu0  ;;  %1375 = vmatprep.subr.bf16.mxu1 %v3815_v20  ;;  %v3677_v28 = vld [vmem:[%s5234_s3 + $0x1a4] ss:$8 sps:$4 sm:$0xff]  }
 0x141   : > { %v946_v1 = vadd.bf16 %v921_v0, %v802_v57  ;;  %v801_v2 = vpack.c.bf16 %v761_v45, %v758_v38  ;;  %v3610_v38 = vld [vmem:[%s5234_s3 + $0x30] ss:$8 sps:$4 sm:$0xff]   ;;  %v3620_v45 = vld [vmem:[%s5234_s3 + $0x74] ss:$8 sps:$4 sm:$0xff]   ;;  %v3649_v0 = vld [vmem:[%s5234_s3 + $0x100] ss:$8 sps:$4 sm:$0xff]  }
 0x142   : > { %v3545_v51 = vpop.f32.mrf.mxu0  ;;  %v3638_v57 = vld [vmem:[%s5234_s3 + $0xd4] ss:$8 sps:$4 sm:$0xff]  }
 0x143   : > { %1376 = vmatpush1.bf16.msra.mxu1 %v967_v49  ;;  %v962_v8 = vmul.bf16 1009007652, %v946_v1  ;;  %v945_v10 = vadd.bf16 %v916_v5, %v801_v2  ;;  %v3625_v49 = vld [vmem:[%s5234_s3 + $0x80] ss:$8 sps:$4 sm:$0xff]   ;;  %v3652_v2 = vld [vmem:[%s5234_s3 + $0x110] ss:$8 sps:$4 sm:$0xff]  }
 0x144   : > { %v774_v52 = vpop.f32.mrf.mxu0  ;;  %1377 = vmatprep.subr.bf16.mxu1 %v3815_v20  ;;  %v3656_v5 = vld [vmem:[%s5234_s3 + $0x134] ss:$8 sps:$4 sm:$0xff]  }
 0x145   : > { %v961_v17 = vmul.bf16 1009007652, %v945_v10  ;;  %v978_v18 = vmax.bf16 %v962_v8, %v946_v1  ;;  %v3650_v1 = vld [vmem:[%s5234_s3 + $0x114] ss:$8 sps:$4 sm:$0xff]   ;;  %v3659_v8 = vld [vmem:[%s5234_s3 + $0x144] ss:$8 sps:$4 sm:$0xff]  }
 0x146   : > { %v3546_v48 = vpop.f32.mrf.mxu0 }
 0x147   : > { %v804_v50 = vpack.c.bf16 %v3546_v48, %v3545_v51  ;;  %1378 = vmatpush1.bf16.msra.mxu1 %v966_v54  ;;  %v977_v25 = vmax.bf16 %v961_v17, %v945_v10  ;;  %v3626_v51 = vld [vmem:[%s5234_s3 + $0x94] ss:$8 sps:$4 sm:$0xff]   ;;  %v3631_v54 = vld [vmem:[%s5234_s3 + $0xa0] ss:$8 sps:$4 sm:$0xff]   ;;  %v3634_v48 = vld [vmem:[%s5234_s3 + $0xb0] ss:$8 sps:$4 sm:$0xff]  }
 0x148   : > { %v777_v56 = vpop.f32.mrf.mxu0  ;;  %1379 = vmatprep.subr.bf16.mxu1 %v3815_v20  ;;  %v3661_v10 = vld [vmem:[%s5234_s3 + $0x140] ss:$8 sps:$4 sm:$0xff]   ;;  %v3668_v17 = vld [vmem:[%s5234_s3 + $0x174] ss:$8 sps:$4 sm:$0xff]  }
 0x149   : > { %v948_v58 = vadd.bf16 %v931_v55, %v804_v50  ;;  %v803_v59 = vpack.c.bf16 %v777_v56, %v774_v52  ;;  %v3628_v52 = vld [vmem:[%s5234_s3 + $0x90] ss:$8 sps:$4 sm:$0xff]   ;;  %v3632_v55 = vld [vmem:[%s5234_s3 + $0xb4] ss:$8 sps:$4 sm:$0xff]   ;;  %v3635_v50 = vld [vmem:[%s5234_s3 + $0xc4] ss:$8 sps:$4 sm:$0xff]  }
 0x14a   : > { %v3637_v56 = vld [vmem:[%s5234_s3 + $0xc0] ss:$8 sps:$4 sm:$0xff]  }
 0x14b   : > { %v964_v62 = vmul.bf16 1009007652, %v948_v58  ;;  %v947_v63 = vadd.bf16 %v926_v61, %v803_v59  ;;  %1380 = vmatpush1.bf16.msra.mxu1 %v965_v60  ;;  %v3641_v59 = vld [vmem:[%s5234_s3 + $0xe4] ss:$8 sps:$4 sm:$0xff]   ;;  %v3643_v60 = vld [vmem:[%s5234_s3 + $0xe0] ss:$8 sps:$4 sm:$0xff]  }
 0x14c   : > { %1381 = vmatprep.subr.bf16.mxu1 %v3815_v20  ;;  %v3644_v61 = vld [vmem:[%s5234_s3 + $0xf4] ss:$8 sps:$4 sm:$0xff]  }
 0x14d   : > { %v963_v3 = vmul.bf16 1009007652, %v947_v63  ;;  %v980_v4 = vmax.bf16 %v964_v62, %v948_v58  ;;  %v3640_v58 = vld [vmem:[%s5234_s3 + $0xd0] ss:$8 sps:$4 sm:$0xff]  }
 0x14e   : > { %v3646_v62 = vld [vmem:[%s5234_s3 + $0xf0] ss:$8 sps:$4 sm:$0xff]  }
 0x14f   : > { %1382 = vmatpush2.bf16.msra.mxu1 %v980_v4  ;;  %v979_v11 = vmax.bf16 %v963_v3, %v947_v63  ;;  %v3647_v63 = vld [vmem:[%s5234_s3 + $0x104] ss:$8 sps:$4 sm:$0xff]   ;;  %v3655_v4 = vld [vmem:[%s5234_s3 + $0x120] ss:$8 sps:$4 sm:$0xff]  }
 0x150   : > { %1383 = vmatprep.subr.bf16.mxu1 %v3815_v20  ;;  %v3653_v3 = vld [vmem:[%s5234_s3 + $0x124] ss:$8 sps:$4 sm:$0xff]  }
 0x153   : > { %1384 = vmatpush2.bf16.msra.mxu1 %v979_v11  ;;  %v3662_v11 = vld [vmem:[%s5234_s3 + $0x154] ss:$8 sps:$4 sm:$0xff]  }
 0x154   : > { %1385 = vmatprep.subr.bf16.mxu1 %v3815_v20 }
 0x157   : > { %1386 = vmatpush2.bf16.msra.mxu1 %v978_v18  ;;  %v3670_v18 = vld [vmem:[%s5234_s3 + $0x170] ss:$8 sps:$4 sm:$0xff]  }
 0x158   : > { %1387 = vmatprep.subr.bf16.mxu1 %v3815_v20 }
 0x15b   : > { %1388 = vmatpush2.bf16.msra.mxu1 %v977_v25 }
 0x15c   : > { %1389 = vmatprep.subr.bf16.mxu1 %v3815_v20 }
 0x15f   : > { %1390 = vmatpush2.bf16.msra.mxu1 %v976_v29 }
 0x160   : > { %1391 = vmatprep.subr.bf16.mxu1 %v3815_v20 }
 0x163   : > { %1392 = vmatpush2.bf16.msra.mxu1 %v975_v6  ;;  %v3679_v6 = vld [vmem:[%s5234_s3 + $0x1a0] ss:$8 sps:$4 sm:$0xff]  }
 0x164   : > { %1393 = vmatprep.subr.bf16.mxu1 %v3815_v20 }
 0x167   : > { %1394 = vmatpush2.bf16.msra.mxu1 %v974_v33  ;;  %v3680_v33 = vld [vmem:[%s5234_s3 + $0x1b4] ss:$8 sps:$4 sm:$0xff]  }
 0x168   : > { %1395 = vmatprep.subr.bf16.mxu1 %v3815_v20  ;;  %v3605_v20 = vld [vmem:[%s5234_s3 + $0x24] ss:$8 sps:$4 sm:$0xff]  }
 0x16b   : > { %1396 = vmatpush2.bf16.msra.mxu1 %v973_v34 }
 0x16e   : > { %1398 = vmatmul.mubr.bf16.vlgmr.msra.gmra.mxu1 %v3599_v9 }
 0x16f   : > { %1405 = vmatprep.mubr.bf16.mxu1 %v3602_v16 }
 0x176   : > { %1406 = vmatmul.mubr.bf16.gmra.mxu1 %v3604_v35 }
 0x177   : > { %1413 = vmatprep.mubr.bf16.mxu1 %v3605_v20  ;;  %v3682_v20 = vld [vmem:[%s5234_s3 + $0x1b0] ss:$8 sps:$4 sm:$0xff]  }
 0x17e   : > { %1414 = vmatmul.mubr.bf16.gmra.mxu1 %v3607_v36 }
 0x17f   : > { %1421 = vmatprep.mubr.bf16.mxu1 %v3608_v37  ;;  %v3685_v37 = vld [vmem:[%s5234_s3 + $0x1c4] ss:$8 sps:$4 sm:$0xff]  }
 0x186   : > { %1422 = vmatmul.mubr.bf16.gmra.mxu1 %v3610_v38 }
 0x187   : > { %1429 = vmatprep.mubr.bf16.mxu1 %v3611_v39 }
 0x18e   : > { %1430 = vmatmul.mubr.bf16.gmra.mxu1 %v3613_v40 }
 0x18f   : > { %1437 = vmatprep.mubr.bf16.mxu1 %v3614_v41 }
 0x196   : > { %1438 = vmatmul.mubr.bf16.gmra.mxu1 %v3616_v42  ;;  %v3683_v42 = vld [vmem:[%s5234_s3 + $0x1c0] ss:$8 sps:$4 sm:$0xff]  }
 0x197   : > { %1445 = vmatprep.mubr.bf16.mxu1 %v3617_v43 }
 0x19e   : > { %1446 = vmatmul.mubr.bf16.gmra.mxu1 %v3619_v44  ;;  %v3688_v44 = vld [vmem:[%s5234_s3 + $0x1d4] ss:$8 sps:$4 sm:$0xff]  }
 0x19f   : > { %1453 = vmatprep.mubr.bf16.mxu1 %v3620_v45 }
 0x1a6   : > { %1454 = vmatmul.mubr.bf16.gmra.mxu1 %v3622_v46 }
 0x1a7   : > { %1461 = vmatprep.mubr.bf16.mxu1 %v3623_v47 }
 0x1ae   : > { %1462 = vmatmul.mubr.bf16.gmra.mxu1 %v3625_v49  ;;  %v3697_v49 = vld [vmem:[%s5236_s5 + $0x4] ss:$16 sps:$4 sm:$0xff]  }
 0x1af   : > { %1469 = vmatprep.mubr.bf16.mxu1 %v3626_v51  ;;  %2454 = vmatprep.mubr.bf16.mxu0 %v3697_v49 }
 0x1b6   : > { %1470 = vmatmul.mubr.bf16.gmra.mxu1 %v3628_v52  ;;  %v3686_v52 = vld [vmem:[%s5234_s3 + $0x1d0] ss:$8 sps:$4 sm:$0xff]  }
 0x1b7   : > { %1477 = vmatprep.mubr.bf16.mxu1 %v3629_v53 }
 0x1be   : > { %1478 = vmatmul.mubr.bf16.gmra.mxu1 %v3631_v54  ;;  %v3691_v54 = vld [vmem:[%s5234_s3 + $0x1e4] ss:$8 sps:$4 sm:$0xff]  }
 0x1bf   : > { %1485 = vmatprep.mubr.bf16.mxu1 %v3632_v55 }
 0x1c6   : > { %1486 = vmatmul.mubr.bf16.gmra.mxu1 %v3634_v48 }
 0x1c7   : > { %1493 = vmatprep.mubr.bf16.mxu1 %v3635_v50 }
 0x1ce   : > { %1494 = vmatmul.mubr.bf16.gmra.mxu1 %v3637_v56 }
 0x1cf   : > { %1501 = vmatprep.mubr.bf16.mxu1 %v3638_v57  ;;  %v3689_v57 = vld [vmem:[%s5234_s3 + $0x1e0] ss:$8 sps:$4 sm:$0xff]  }
 0x1d6   : > { %1502 = vmatmul.mubr.bf16.gmra.mxu1 %v3640_v58 }
 0x1d7   : > { %1509 = vmatprep.mubr.bf16.mxu1 %v3641_v59  ;;  %v3694_v59 = vld [vmem:[%s5234_s3 + $0x1f4] ss:$8 sps:$4 sm:$0xff]  }
 0x1de   : > { %1510 = vmatmul.mubr.bf16.gmra.mxu1 %v3643_v60 }
 0x1df   : > { %1517 = vmatprep.mubr.bf16.mxu1 %v3644_v61 }
 0x1e6   : > { %1518 = vmatmul.mubr.bf16.gmra.mxu1 %v3646_v62 }
 0x1e7   : > { %1525 = vmatprep.mubr.bf16.mxu1 %v3647_v63 }
 0x1ee   : > { %1526 = vmatmul.mubr.bf16.gmra.mxu1 %v3649_v0  ;;  %v3692_v0 = vld [vmem:[%s5234_s3 + $0x1f0] ss:$8 sps:$4 sm:$0xff]  }
 0x1ef   : > { %1533 = vmatprep.mubr.bf16.mxu1 %v3650_v1 }
 0x1f6   : > { %1534 = vmatmul.mubr.bf16.gmra.mxu1 %v3652_v2 }
 0x1f7   : > { %1541 = vmatprep.mubr.bf16.mxu1 %v3653_v3 }
 0x1fe   : > { %1542 = vmatmul.mubr.bf16.gmra.mxu1 %v3655_v4 }
 0x1ff   : > { %1549 = vmatprep.mubr.bf16.mxu1 %v3656_v5 }
 0x206   : > { %1550 = vmatmul.mubr.bf16.gmra.mxu1 %v3658_v7 }
 0x207   : > { %1557 = vmatprep.mubr.bf16.mxu1 %v3659_v8 }
 0x20e   : > { %1558 = vmatmul.mubr.bf16.gmra.mxu1 %v3661_v10 }
 0x20f   : > { %1565 = vmatprep.mubr.bf16.mxu1 %v3662_v11 }
 0x216   : > { %1566 = vmatmul.mubr.bf16.gmra.mxu1 %v3664_v12 }
 0x217   : > { %1573 = vmatprep.mubr.bf16.mxu1 %v3665_v13 }
 0x21e   : > { %1574 = vmatmul.mubr.bf16.gmra.mxu1 %v3667_v15 }
 0x21f   : > { %1581 = vmatprep.mubr.bf16.mxu1 %v3668_v17 }
 0x226   : > { %1582 = vmatmul.mubr.bf16.gmra.mxu1 %v3670_v18 }
 0x227   : > { %1589 = vmatprep.mubr.bf16.mxu1 %v3671_v19 }
 0x22e   : > { %v4571_v23 = vpop.f32.mrf.mxu1  ;;  %1590 = vmatmul.mubr.bf16.gmra.mxu1 %v3673_v21 }
 0x22f   : > { %1597 = vmatprep.mubr.bf16.mxu1 %v3674_v22 }
 0x230   : > { %v1401_v25 = vpop.f32.mrf.mxu1 }
 0x232   : > { %v4573_v26 = vpop.f32.mrf.mxu1 }
 0x233   : > { %v1654_v24 = vpack.c.bf16 %v4573_v26, %v4571_v23 }
 0x234   : > { %v1404_v29 = vpop.f32.mrf.mxu1 }
 0x236   : > { %v4583_v30 = vpop.f32.mrf.mxu1  ;;  %1598 = vmatmul.mubr.bf16.gmra.mxu1 %v3676_v27 }
 0x237   : > { %1605 = vmatprep.mubr.bf16.mxu1 %v3677_v28 }
 0x238   : > { %v1409_v31 = vpop.f32.mrf.mxu1 }
 0x23a   : > { %v4585_v32 = vpop.f32.mrf.mxu1 }
 0x23b   : > { %v1655_v14 = vpack.c.bf16 %v4585_v32, %v4583_v30 }
 0x23c   : > { %v1412_v34 = vpop.f32.mrf.mxu1 }
 0x23e   : > { %v4595_v9 = vpop.f32.mrf.mxu1  ;;  %1606 = vmatmul.mubr.bf16.gmra.mxu1 %v3679_v6 }
 0x23f   : > { %1613 = vmatprep.mubr.bf16.mxu1 %v3680_v33 }
 0x240   : > { %v1417_v16 = vpop.f32.mrf.mxu1 }
 0x242   : > { %v4597_v35 = vpop.f32.mrf.mxu1 }
 0x243   : > { %v1656_v36 = vpack.c.bf16 %v4597_v35, %v4595_v9 }
 0x244   : > { %v1420_v38 = vpop.f32.mrf.mxu1 }
 0x246   : > { %v4607_v39 = vpop.f32.mrf.mxu1  ;;  %1614 = vmatmul.mubr.bf16.gmra.mxu1 %v3682_v20 }
 0x247   : > { %1621 = vmatprep.mubr.bf16.mxu1 %v3685_v37 }
 0x248   : > { %v1425_v40 = vpop.f32.mrf.mxu1 }
 0x24a   : > { %v4609_v41 = vpop.f32.mrf.mxu1 }
 0x24b   : > { %v1657_v43 = vpack.c.bf16 %v4609_v41, %v4607_v39 }
 0x24c   : > { %v1428_v45 = vpop.f32.mrf.mxu1 }
 0x24e   : > { %v4619_v46 = vpop.f32.mrf.mxu1  ;;  %1622 = vmatmul.mubr.bf16.gmra.mxu1 %v3683_v42  ;;  %v1860_v42 = vpop.permute.xlu0 %1859 }
 0x24f   : > { %1629 = vmatprep.mubr.bf16.mxu1 %v3688_v44 }
 0x250   : > { %v1433_v47 = vpop.f32.mrf.mxu1 }
 0x251   : > { %v1820_v47 = vpop.permute.xlu1 %1819 }
 0x252   : > { %v4624_v51 = vpop.f32.mrf.mxu1 }
 0x253   : > { %v1658_v53 = vpack.c.bf16 %v4624_v51, %v4619_v46 }
 0x254   : > { %v1436_v55 = vpop.f32.mrf.mxu1 }
 0x256   : > { %v4634_v48 = vpop.f32.mrf.mxu1  ;;  %1630 = vmatmul.mubr.bf16.gmra.mxu1 %v3686_v52  ;;  %v1855_v52 = vpop.permute.xlu0 %1854 }
 0x257   : > { %1637 = vmatprep.mubr.bf16.mxu1 %v3691_v54 }
 0x258   : > { %v1441_v50 = vpop.f32.mrf.mxu1 }
 0x259   : > { %v1815_v50 = vpop.permute.xlu1 %1814 }
 0x25a   : > { %v4636_v56 = vpop.f32.mrf.mxu1 }
 0x25b   : > { %v1659_v58 = vpack.c.bf16 %v4636_v56, %v4634_v48 }
 0x25c   : > { %v1444_v60 = vpop.f32.mrf.mxu1 }
 0x25e   : > { %v4646_v61 = vpop.f32.mrf.mxu1  ;;  %1638 = vmatmul.mubr.bf16.gmra.mxu1 %v3689_v57 }
 0x25f   : > { %1645 = vmatprep.mubr.bf16.mxu1 %v3694_v59  ;;  %v1850_v59 = vpop.permute.xlu0 %1849 }
 0x260   : > { %v1449_v62 = vpop.f32.mrf.mxu1 }
 0x261   : > { %v1810_v62 = vpop.permute.xlu1 %1809 }
 0x262   : > { %v1450_v63 = vpop.f32.mrf.mxu1 }
 0x263   : > { %v1660_v1 = vpack.c.bf16 %v1450_v63, %v4646_v61 }
 0x264   : > { %v1452_v2 = vpop.f32.mrf.mxu1 }
 0x265   : > { %v1845_v2 = vpop.permute.xlu0 %1844 }
 0x266   : > { %v1455_v3 = vpop.f32.mrf.mxu1  ;;  %1646 = vmatmul.mubr.bf16.gmra.mxu1 %v3692_v0 }
 0x268   : > { %v1457_v4 = vpop.f32.mrf.mxu1 }
 0x26a   : > { %v1458_v5 = vpop.f32.mrf.mxu1 }
 0x26b   : > { %v1661_v7 = vpack.c.bf16 %v1458_v5, %v1455_v3 }
 0x26c   : > { %v1460_v8 = vpop.f32.mrf.mxu1 }
 0x26d   : > { %v1949_v3 = vadd.bf16 %v1820_v47, %v1661_v7  ;;  %v1947_v7 = vadd.bf16 %v1810_v62, %v1659_v58 }
 0x26e   : > { %v4652_v10 = vpop.f32.mrf.mxu1 }
 0x26f   : > { %v1979_v58 = vmul.bf16 1009007652, %v1947_v7 }
 0x270   : > { %v1465_v11 = vpop.f32.mrf.mxu1 }
 0x271   : > { %v2011_v51 = vmax.bf16 %v1979_v58, %v1947_v7  ;;  %v3700_v58 = vld [vmem:[%s5236_s5 + $0x20] ss:$16 sps:$4 sm:$0xff]  }
 0x272   : > { %v4654_v12 = vpop.f32.mrf.mxu1 }
 0x273   : > { %v1662_v13 = vpack.c.bf16 %v4654_v12, %v4652_v10 }
 0x274   : > { %v1468_v15 = vpop.f32.mrf.mxu1 }
 0x276   : > { %v4658_v17 = vpop.f32.mrf.mxu1 }
 0x278   : > { %v1473_v18 = vpop.f32.mrf.mxu1 }
 0x279   : > { %v1805_v18 = vpop.permute.xlu1 %1804 }
 0x27a   : > { %v4660_v19 = vpop.f32.mrf.mxu1  ;;  %v1946_v56 = vadd.bf16 %v1805_v18, %v1658_v53 }
 0x27b   : > { %v1663_v21 = vpack.c.bf16 %v4660_v19, %v4658_v17 }
 0x27c   : > { %v1476_v22 = vpop.f32.mrf.mxu1  ;;  %v1978_v46 = vmul.bf16 1009007652, %v1946_v56 }
 0x27d   : > { %v1800_v47 = vpop.permute.xlu1 %1799 }
 0x27e   : > { %v4664_v25 = vpop.f32.mrf.mxu1  ;;  %v2010_v41 = vmax.bf16 %v1978_v46, %v1946_v56  ;;  %v3704_v46 = vld [vmem:[%s5236_s5 + $0x64] ss:$16 sps:$4 sm:$0xff]  }
 0x280   : > { %v1481_v27 = vpop.f32.mrf.mxu1 }
 0x281   : > { %v1948_v27 = vadd.bf16 %v1815_v50, %v1660_v1 }
 0x282   : > { %v4666_v28 = vpop.f32.mrf.mxu1 }
 0x284   : > { %v1484_v29 = vpop.f32.mrf.mxu1 }
 0x285   : > { %v1981_v29 = vmul.bf16 1009007652, %v1949_v3 }
 0x286   : > { %v4668_v31 = vpop.f32.mrf.mxu1 }
 0x288   : > { %v1489_v6 = vpop.f32.mrf.mxu1 }
 0x28a   : > { %v4670_v33 = vpop.f32.mrf.mxu1 }
 0x28c   : > { %v1492_v34 = vpop.f32.mrf.mxu1 }
 0x28e   : > { %v1495_v16 = vpop.f32.mrf.mxu1 }
 0x290   : > { %v1497_v20 = vpop.f32.mrf.mxu1 }
 0x292   : > { %v1498_v37 = vpop.f32.mrf.mxu1 }
 0x293   : > { %v1666_v34 = vpack.c.bf16 %v1498_v37, %v1495_v16 }
 0x294   : > { %v1500_v38 = vpop.f32.mrf.mxu1 }
 0x296   : > { %v1503_v40 = vpop.f32.mrf.mxu1 }
 0x298   : > { %v1505_v44 = vpop.f32.mrf.mxu1 }
 0x29a   : > { %v1506_v45 = vpop.f32.mrf.mxu1 }
 0x29b   : > { %v1667_v5 = vpack.c.bf16 %v1506_v45, %v1503_v40  ;;  %v1980_v40 = vmul.bf16 1009007652, %v1948_v27  ;;  %v2013_v45 = vmax.bf16 %v1981_v29, %v1949_v3 }
 0x29c   : > { %v1508_v49 = vpop.f32.mrf.mxu1 }
 0x29d   : > { %v1955_v20 = vadd.bf16 %v1850_v59, %v1667_v5  ;;  %v1840_v49 = vpop.permute.xlu0 %1839  ;;  %v1664_v59 = vpack.c.bf16 %v4666_v28, %v4664_v25 }
 0x29e   : > { %v1511_v54 = vpop.f32.mrf.mxu1 }
 0x29f   : > { %v1987_v16 = vmul.bf16 1009007652, %v1955_v20 }
 0x2a0   : > { %v1513_v55 = vpop.f32.mrf.mxu1 }
 0x2a1   : > { %v1835_v48 = vpop.permute.xlu0 %1834  ;;  %v2019_v62 = vmax.bf16 %v1987_v16, %v1955_v20  ;;  %v3698_v16 = vld [vmem:[%s5236_s5 + $0x24] ss:$16 sps:$4 sm:$0xff]  }
 0x2a2   : > { %v1514_v57 = vpop.f32.mrf.mxu1  ;;  %v1952_v3 = vadd.bf16 %v1835_v48, %v1664_v59  ;;  %v3701_v59 = vld [vmem:[%s5236_s5 + $0x44] ss:$16 sps:$4 sm:$0xff]  }
 0x2a3   : > { %v1668_v63 = vpack.c.bf16 %v1514_v57, %v1511_v54 }
 0x2a4   : > { %v1516_v60 = vpop.f32.mrf.mxu1 }
 0x2a5   : > { %v1956_v8 = vadd.bf16 %v1855_v52, %v1668_v63  ;;  %v1954_v52 = vadd.bf16 %v1845_v2, %v1666_v34  ;;  %v1945_v2 = vadd.bf16 %v1800_v47, %v1657_v43  ;;  %v1830_v5 = vpop.permute.xlu0 %1829 }
 0x2a6   : > { %v1519_v61 = vpop.f32.mrf.mxu1  ;;  %v1951_v18 = vadd.bf16 %v1830_v5, %v1663_v21  ;;  %v3706_v5 = vld [vmem:[%s5236_s5 + $0x60] ss:$16 sps:$4 sm:$0xff]  }
 0x2a7   : > { %v1988_v38 = vmul.bf16 1009007652, %v1956_v8  ;;  %v1977_v39 = vmul.bf16 1009007652, %v1945_v2 }
 0x2a8   : > { %v1521_v0 = vpop.f32.mrf.mxu1  ;;  %v1983_v17 = vmul.bf16 1009007652, %v1951_v18 }
 0x2a9   : > { %v2020_v50 = vmax.bf16 %v1988_v38, %v1956_v8  ;;  %v1795_v0 = vpop.permute.xlu1 %1794  ;;  %v1825_v34 = vpop.permute.xlu0 %1824 }
 0x2aa   : > { %v1522_v4 = vpop.f32.mrf.mxu1  ;;  %v1950_v38 = vadd.bf16 %v1825_v34, %v1662_v13  ;;  %v2015_v10 = vmax.bf16 %v1983_v17, %v1951_v18 }
 0x2ab   : > { %v1669_v11 = vpack.c.bf16 %v1522_v4, %v1519_v61  ;;  %v1986_v61 = vmul.bf16 1009007652, %v1954_v52 }
 0x2ac   : > { %v1524_v15 = vpop.f32.mrf.mxu1 }
 0x2ad   : > { %v1957_v22 = vadd.bf16 %v1860_v42, %v1669_v11  ;;  %v1665_v42 = vpack.c.bf16 %v4670_v33, %v4668_v31  ;;  %v2012_v31 = vmax.bf16 %v1980_v40, %v1948_v27  ;;  %v2018_v28 = vmax.bf16 %v1986_v61, %v1954_v52  ;;  %v1790_v15 = vpop.permute.xlu1 %1789 }
 0x2ae   : > { %v4672_v6 = vpop.f32.mrf.mxu1  ;;  %v1944_v11 = vadd.bf16 %v1795_v0, %v1656_v36  ;;  %v1943_v9 = vadd.bf16 %v1790_v15, %v1655_v14  ;;  %v2009_v36 = vmax.bf16 %v1977_v39, %v1945_v2  ;;  %v3703_v0 = vld [vmem:[%s5236_s5 + $0x40] ss:$16 sps:$4 sm:$0xff]  }
 0x2af   : > { %v1989_v44 = vmul.bf16 1009007652, %v1957_v22  ;;  %v1953_v60 = vadd.bf16 %v1840_v49, %v1665_v42 }
 0x2b0   : > { %v1529_v54 = vpop.f32.mrf.mxu1  ;;  %v1976_v35 = vmul.bf16 1009007652, %v1944_v11  ;;  %v1975_v32 = vmul.bf16 1009007652, %v1943_v9 }
 0x2b1   : > { %v2021_v55 = vmax.bf16 %v1989_v44, %v1957_v22  ;;  %v1985_v4 = vmul.bf16 1009007652, %v1953_v60  ;;  %v1984_v22 = vmul.bf16 1009007652, %v1952_v3  ;;  %v1785_v49 = vpop.permute.xlu1 %1784 }
 0x2b2   : > { %v4679_v1 = vpop.f32.mrf.mxu1  ;;  %v1942_v30 = vadd.bf16 %v1785_v49, %v1654_v24  ;;  %v2008_v14 = vmax.bf16 %v1976_v35, %v1944_v11  ;;  %v2007_v7 = vmax.bf16 %v1975_v32, %v1943_v9  ;;  %v3695_v24 = vld [vmem:[%s5236_s5] ss:$16 sps:$4 sm:$0xff]   ;;  %v3707_v11 = vld [vmem:[%s5236_s5 + $0x84] ss:$16 sps:$4 sm:$0xff]  }
 0x2b3   : > { %v1670_v37 = vpack.c.bf16 %v4679_v1, %v4672_v6  ;;  %3253 = vmatprep.subr.bf16.mxu0 %v2021_v55  ;;  %v2017_v27 = vmax.bf16 %v1985_v4, %v1953_v60  ;;  %v2016_v21 = vmax.bf16 %v1984_v22, %v1952_v3  ;;  %v1982_v55 = vmul.bf16 1009007652, %v1950_v38  ;;  %v3709_v22 = vld [vmem:[%s5236_s5 + $0x80] ss:$16 sps:$4 sm:$0xff]   ;;  %v3743_v1 = vld [vmem:[%s5236_s5 + $0x8] ss:$16 sps:$4 sm:$0xff]  }
 0x2b4   : > { %v1532_v57 = vpop.f32.mrf.mxu1  ;;  %3254 = vmatpush3.bf16.msra.mxu0 %v2013_v45  ;;  %v1974_v13 = vmul.bf16 1009007652, %v1942_v30 }
 0x2b5   : > { %3255 = vmatprep.subr.bf16.mxu0 %v2020_v50  ;;  %v2014_v42 = vmax.bf16 %v1982_v55, %v1950_v38  ;;  %v3712_v38 = vld [vmem:[%s5236_s5 + $0xa0] ss:$16 sps:$4 sm:$0xff]  }
 0x2b6   : > { %v4686_v33 = vpop.f32.mrf.mxu1  ;;  %v2006_v23 = vmax.bf16 %v1974_v13, %v1942_v30 }
 0x2b8   : > { %v1537_v63 = vpop.f32.mrf.mxu1  ;;  %3256 = vmatpush3.bf16.msra.mxu0 %v2012_v31 }
 0x2b9   : > { %3257 = vmatprep.subr.bf16.mxu0 %v2019_v62 }
 0x2ba   : > { %v4693_v53 = vpop.f32.mrf.mxu1 }
 0x2bb   : > { %v1671_v25 = vpack.c.bf16 %v4693_v53, %v4686_v33 }
 0x2bc   : > { %v1540_v8 = vpop.f32.mrf.mxu1  ;;  %3258 = vmatpush3.bf16.msra.mxu0 %v2011_v51 }
 0x2bd   : > { %3259 = vmatprep.subr.bf16.mxu0 %v2018_v28 }
 0x2be   : > { %v4700_v43 = vpop.f32.mrf.mxu1 }
 0x2c0   : > { %v1545_v29 = vpop.f32.mrf.mxu1  ;;  %3260 = vmatpush3.bf16.msra.mxu0 %v2010_v41 }
 0x2c1   : > { %3261 = vmatprep.subr.bf16.mxu0 %v2017_v27  ;;  %v3710_v29 = vld [vmem:[%s5236_s5 + $0xa4] ss:$16 sps:$4 sm:$0xff]  }
 0x2c2   : > { %v4708_v20 = vpop.f32.mrf.mxu1 }
 0x2c3   : > { %v1672_v19 = vpack.c.bf16 %v4708_v20, %v4700_v43 }
 0x2c4   : > { %v1548_v44 = vpop.f32.mrf.mxu1  ;;  %3262 = vmatpush3.bf16.msra.mxu0 %v2009_v36 }
 0x2c5   : > { %3263 = vmatprep.subr.bf16.mxu0 %v2016_v21  ;;  %v3713_v21 = vld [vmem:[%s5236_s5 + $0xc4] ss:$16 sps:$4 sm:$0xff]  }
 0x2c6   : > { %v4718_v54 = vpop.f32.mrf.mxu1 }
 0x2c8   : > { %v1553_v12 = vpop.f32.mrf.mxu1  ;;  %3264 = vmatpush3.bf16.msra.mxu0 %v2008_v14  ;;  %v3715_v14 = vld [vmem:[%s5236_s5 + $0xc0] ss:$16 sps:$4 sm:$0xff]  }
 0x2c9   : > { %3265 = vmatprep.subr.bf16.mxu0 %v2015_v10  ;;  %v3716_v10 = vld [vmem:[%s5236_s5 + $0xe4] ss:$16 sps:$4 sm:$0xff]  }
 0x2ca   : > { %v4720_v40 = vpop.f32.mrf.mxu1 }
 0x2cb   : > { %v1673_v45 = vpack.c.bf16 %v4720_v40, %v4718_v54 }
 0x2cc   : > { %v1556_v47 = vpop.f32.mrf.mxu1  ;;  %3266 = vmatpush3.bf16.msra.mxu0 %v2007_v7 }
 0x2cd   : > { %3267 = vmatprep.subr.bf16.mxu0 %v2014_v42  ;;  %v3718_v42 = vld [vmem:[%s5236_s5 + $0xe0] ss:$16 sps:$4 sm:$0xff]  }
 0x2ce   : > { %v4724_v26 = vpop.f32.mrf.mxu1 }
 0x2d0   : > { %v1561_v52 = vpop.f32.mrf.mxu1  ;;  %3268 = vmatpush3.bf16.msra.mxu0 %v2006_v23  ;;  %v3719_v23 = vld [vmem:[%s5236_s5 + $0x104] ss:$16 sps:$4 sm:$0xff]  }
 0x2d2   : > { %v4732_v50 = vpop.f32.mrf.mxu1 }
 0x2d3   : > { %v1674_v57 = vpack.c.bf16 %v4732_v50, %v4724_v26  ;;  %2455 = vmatmul.mubr.bf16.vlgmr.msra.gmra.mxu0 %v3695_v24 }
 0x2d4   : > { %v1564_v48 = vpop.f32.mrf.mxu1  ;;  %2462 = vmatprep.mubr.bf16.mxu0 %v3698_v16 }
 0x2d5   : > { %v3721_v48 = vld [vmem:[%s5236_s5 + $0x100] ss:$16 sps:$4 sm:$0xff]  }
 0x2d6   : > { %v4736_v56 = vpop.f32.mrf.mxu1 }
 0x2d8   : > { %v1569_v31 = vpop.f32.mrf.mxu1 }
 0x2d9   : > { %v3722_v31 = vld [vmem:[%s5236_s5 + $0x124] ss:$16 sps:$4 sm:$0xff]  }
 0x2da   : > { %v4744_v60 = vpop.f32.mrf.mxu1 }
 0x2db   : > { %v1675_v61 = vpack.c.bf16 %v4744_v60, %v4736_v56  ;;  %2463 = vmatmul.mubr.bf16.gmra.mxu0 %v3700_v58 }
 0x2dc   : > { %v1572_v62 = vpop.f32.mrf.mxu1  ;;  %2470 = vmatprep.mubr.bf16.mxu0 %v3701_v59 }
 0x2de   : > { %v4748_v63 = vpop.f32.mrf.mxu1 }
 0x2e0   : > { %v1577_v2 = vpop.f32.mrf.mxu1 }
 0x2e1   : > { %v3724_v2 = vld [vmem:[%s5236_s5 + $0x120] ss:$16 sps:$4 sm:$0xff]  }
 0x2e2   : > { %v4756_v51 = vpop.f32.mrf.mxu1 }
 0x2e3   : > { %v1676_v3 = vpack.c.bf16 %v4756_v51, %v4748_v63  ;;  %2471 = vmatmul.mubr.bf16.gmra.mxu0 %v3703_v0 }
 0x2e4   : > { %v1580_v4 = vpop.f32.mrf.mxu1  ;;  %2478 = vmatprep.mubr.bf16.mxu0 %v3704_v46  ;;  %v1940_v46 = vpop.permute.xlu0 %1939 }
 0x2e6   : > { %v4760_v28 = vpop.f32.mrf.mxu1 }
 0x2e8   : > { %v1585_v8 = vpop.f32.mrf.mxu1 }
 0x2ea   : > { %v4768_v39 = vpop.f32.mrf.mxu1 }
 0x2eb   : > { %v1677_v41 = vpack.c.bf16 %v4768_v39, %v4760_v28  ;;  %2479 = vmatmul.mubr.bf16.gmra.mxu0 %v3706_v5  ;;  %v3725_v5 = vld [vmem:[%s5236_s5 + $0x144] ss:$16 sps:$4 sm:$0xff]   ;;  %v3733_v28 = vld [vmem:[%s5236_s5 + $0x180] ss:$16 sps:$4 sm:$0xff]  }
 0x2ec   : > { %v1588_v15 = vpop.f32.mrf.mxu1  ;;  %2486 = vmatprep.mubr.bf16.mxu0 %v3707_v11  ;;  %v1900_v11 = vpop.permute.xlu1 %1899 }
 0x2ee   : > { %v4772_v18 = vpop.f32.mrf.mxu1 }
 0x2f0   : > { %v1593_v27 = vpop.f32.mrf.mxu1 }
 0x2f2   : > { %v4780_v34 = vpop.f32.mrf.mxu1 }
 0x2f3   : > { %v1678_v9 = vpack.c.bf16 %v4780_v34, %v4772_v18  ;;  %2487 = vmatmul.mubr.bf16.gmra.mxu0 %v3709_v22  ;;  %v1935_v22 = vpop.permute.xlu0 %1934  ;;  %v3742_v18 = vld [vmem:[%s5236_s5 + $0x1e0] ss:$16 sps:$4 sm:$0xff]   ;;  %v3745_v34 = vld [vmem:[%s5236_s5 + $0xc] ss:$16 sps:$4 sm:$0xff]  }
 0x2f4   : > { %v1596_v35 = vpop.f32.mrf.mxu1  ;;  %2494 = vmatprep.mubr.bf16.mxu0 %v3710_v29  ;;  %v3727_v29 = vld [vmem:[%s5236_s5 + $0x140] ss:$16 sps:$4 sm:$0xff]  }
 0x2f6   : > { %v4784_v36 = vpop.f32.mrf.mxu1 }
 0x2f8   : > { %v1601_v17 = vpop.f32.mrf.mxu1 }
 0x2f9   : > { %v1895_v17 = vpop.permute.xlu1 %1894 }
 0x2fa   : > { %v4792_v44 = vpop.f32.mrf.mxu1 }
 0x2fb   : > { %v1679_v49 = vpack.c.bf16 %v4792_v44, %v4784_v36  ;;  %2495 = vmatmul.mubr.bf16.gmra.mxu0 %v3712_v38  ;;  %v3728_v38 = vld [vmem:[%s5236_s5 + $0x164] ss:$16 sps:$4 sm:$0xff]  }
 0x2fc   : > { %v1604_v30 = vpop.f32.mrf.mxu1  ;;  %2502 = vmatprep.mubr.bf16.mxu0 %v3713_v21 }
 0x2fd   : > { %v1930_v30 = vpop.permute.xlu0 %1929 }
 0x2fe   : > { %v4796_v32 = vpop.f32.mrf.mxu1 }
 0x300   : > { %v1609_v55 = vpop.f32.mrf.mxu1 }
 0x302   : > { %v4804_v12 = vpop.f32.mrf.mxu1 }
 0x303   : > { %2503 = vmatmul.mubr.bf16.gmra.mxu0 %v3715_v14 }
 0x304   : > { %v1612_v13 = vpop.f32.mrf.mxu1  ;;  %2510 = vmatprep.mubr.bf16.mxu0 %v3716_v10  ;;  %v1890_v10 = vpop.permute.xlu1 %1889 }
 0x305   : > { %v1963_v63 = vadd.bf16 %v1890_v10, %v1675_v61  ;;  %v3737_v10 = vld [vmem:[%s5236_s5 + $0x1c4] ss:$16 sps:$4 sm:$0xff]  }
 0x306   : > { %v4806_v7 = vpop.f32.mrf.mxu1 }
 0x307   : > { %v1995_v60 = vmul.bf16 1009007652, %v1963_v63 }
 0x308   : > { %v1617_v47 = vpop.f32.mrf.mxu1 }
 0x30a   : > { %v4814_v24 = vpop.f32.mrf.mxu1 }
 0x30b   : > { %2511 = vmatmul.mubr.bf16.gmra.mxu0 %v3718_v42  ;;  %v3730_v42 = vld [vmem:[%s5236_s5 + $0x160] ss:$16 sps:$4 sm:$0xff]  }
 0x30c   : > { %v1620_v52 = vpop.f32.mrf.mxu1  ;;  %2518 = vmatprep.mubr.bf16.mxu0 %v3719_v23  ;;  %v3731_v23 = vld [vmem:[%s5236_s5 + $0x184] ss:$16 sps:$4 sm:$0xff]  }
 0x30d   : > { %v1925_v52 = vpop.permute.xlu0 %1924 }
 0x30e   : > { %v1623_v16 = vpop.f32.mrf.mxu1 }
 0x310   : > { %v1625_v58 = vpop.f32.mrf.mxu1 }
 0x311   : > { %v1920_v39 = vpop.permute.xlu0 %1919 }
 0x312   : > { %v1626_v59 = vpop.f32.mrf.mxu1 }
 0x313   : > { %2519 = vmatmul.mubr.bf16.gmra.mxu0 %v3721_v48  ;;  %v1965_v48 = vadd.bf16 %v1900_v11, %v1677_v41  ;;  %v3734_v41 = vld [vmem:[%s5236_s5 + $0x1a4] ss:$16 sps:$4 sm:$0xff]  }
 0x314   : > { %v1628_v62 = vpop.f32.mrf.mxu1  ;;  %2526 = vmatprep.mubr.bf16.mxu0 %v3722_v31 }
 0x316   : > { %v1631_v0 = vpop.f32.mrf.mxu1 }
 0x318   : > { %v1633_v4 = vpop.f32.mrf.mxu1 }
 0x31a   : > { %v1634_v8 = vpop.f32.mrf.mxu1 }
 0x31b   : > { %2527 = vmatmul.mubr.bf16.gmra.mxu0 %v3724_v2  ;;  %v1683_v31 = vpack.c.bf16 %v1634_v8, %v1631_v0 }
 0x31c   : > { %v1636_v15 = vpop.f32.mrf.mxu1  ;;  %2534 = vmatprep.mubr.bf16.mxu0 %v3725_v5  ;;  %v1885_v5 = vpop.permute.xlu1 %1884 }
 0x31d   : > { %v1962_v56 = vadd.bf16 %v1885_v5, %v1674_v57  ;;  %v2027_v57 = vmax.bf16 %v1995_v60, %v1963_v63  ;;  %v3758_v63 = vld [vmem:[%s5236_s5 + $0xa8] ss:$16 sps:$4 sm:$0xff]  }
 0x31e   : > { %v1639_v27 = vpop.f32.mrf.mxu1 }
 0x31f   : > { %v1994_v50 = vmul.bf16 1009007652, %v1962_v56 }
 0x320   : > { %v1641_v35 = vpop.f32.mrf.mxu1 }
 0x321   : > { %v1682_v35 = vpack.c.bf16 %v1626_v59, %v1623_v16  ;;  %v1880_v16 = vpop.permute.xlu1 %1879  ;;  %v1681_v59 = vpack.c.bf16 %v4814_v24, %v4806_v7 }
 0x322   : > { %v1642_v21 = vpop.f32.mrf.mxu1  ;;  %v1961_v26 = vadd.bf16 %v1880_v16, %v1673_v45  ;;  %v3766_v16 = vld [vmem:[%s5236_s5 + $0xec] ss:$16 sps:$4 sm:$0xff]  }
 0x323   : > { %2535 = vmatmul.mubr.bf16.gmra.mxu0 %v3727_v29  ;;  %v1684_v13 = vpack.c.bf16 %v1642_v21, %v1639_v27  ;;  %v1964_v27 = vadd.bf16 %v1895_v17, %v1676_v3  ;;  %v1997_v29 = vmul.bf16 1009007652, %v1965_v48  ;;  %v1680_v17 = vpack.c.bf16 %v4804_v12, %v4796_v32 }
 0x324   : > { %v1644_v14 = vpop.f32.mrf.mxu1  ;;  %2542 = vmatprep.mubr.bf16.mxu0 %v3728_v38  ;;  %v1971_v38 = vadd.bf16 %v1930_v30, %v1683_v31  ;;  %v1969_v30 = vadd.bf16 %v1920_v39, %v1681_v59  ;;  %v3739_v31 = vld [vmem:[%s5236_s5 + $0x1c0] ss:$16 sps:$4 sm:$0xff]   ;;  %v3757_v39 = vld [vmem:[%s5236_s5 + $0x8c] ss:$16 sps:$4 sm:$0xff]   ;;  %v3764_v59 = vld [vmem:[%s5236_s5 + $0xe8] ss:$16 sps:$4 sm:$0xff]  }
 0x325   : > { %v1972_v62 = vadd.bf16 %v1935_v22, %v1684_v13  ;;  %v1996_v51 = vmul.bf16 1009007652, %v1964_v27  ;;  %v2029_v3 = vmax.bf16 %v1997_v29, %v1965_v48  ;;  %v1915_v22 = vpop.permute.xlu0 %1914  ;;  %v1875_v13 = vpop.permute.xlu1 %1874  ;;  %v2026_v48 = vmax.bf16 %v1994_v50, %v1962_v56  ;;  %v3773_v50 = vld [vmem:[%s5236_s5 + $0x148] ss:$16 sps:$4 sm:$0xff]  }
 0x326   : > { %v1647_v55 = vpop.f32.mrf.mxu1  ;;  %v2003_v8 = vmul.bf16 1009007652, %v1971_v38  ;;  %v1968_v32 = vadd.bf16 %v1915_v22, %v1680_v17  ;;  %v2001_v12 = vmul.bf16 1009007652, %v1969_v30  ;;  %v3770_v17 = vld [vmem:[%s5236_s5 + $0x128] ss:$16 sps:$4 sm:$0xff]  }
 0x327   : > { %v2004_v21 = vmul.bf16 1009007652, %v1972_v62  ;;  %v2028_v61 = vmax.bf16 %v1996_v51, %v1964_v27  ;;  %v3763_v51 = vld [vmem:[%s5236_s5 + $0xcc] ss:$16 sps:$4 sm:$0xff]  }
 0x328   : > { %v1649_v47 = vpop.f32.mrf.mxu1  ;;  %v2035_v24 = vmax.bf16 %v2003_v8, %v1971_v38  ;;  %v2000_v40 = vmul.bf16 1009007652, %v1968_v32  ;;  %v2033_v45 = vmax.bf16 %v2001_v12, %v1969_v30  ;;  %v3749_v38 = vld [vmem:[%s5236_s5 + $0x4c] ss:$16 sps:$4 sm:$0xff]   ;;  %v3767_v8 = vld [vmem:[%s5236_s5 + $0x108] ss:$16 sps:$4 sm:$0xff]  }
 0x329   : > { %v2036_v11 = vmax.bf16 %v2004_v21, %v1972_v62  ;;  %v1910_v47 = vpop.permute.xlu0 %1909  ;;  %v3740_v62 = vld [vmem:[%s5236_s5 + $0x1e4] ss:$16 sps:$4 sm:$0xff]   ;;  %v3751_v21 = vld [vmem:[%s5236_s5 + $0x48] ss:$16 sps:$4 sm:$0xff]   ;;  %v3775_v30 = vld [vmem:[%s5236_s5 + $0x14c] ss:$16 sps:$4 sm:$0xff]  }
 0x32a   : > { %v1650_v58 = vpop.f32.mrf.mxu1  ;;  %v1967_v54 = vadd.bf16 %v1910_v47, %v1679_v49 }
 0x32b   : > { %v1685_v2 = vpack.c.bf16 %v1650_v58, %v1647_v55  ;;  %2543 = vmatmul.mubr.bf16.gmra.mxu0 %v3730_v42  ;;  %v3736_v55 = vld [vmem:[%s5236_s5 + $0x1a0] ss:$16 sps:$4 sm:$0xff]   ;;  %v1870_v58 = vpop.permute.xlu1 %1869 }
 0x32c   : > { %v1652_v4 = vpop.f32.mrf.mxu1  ;;  %2550 = vmatprep.mubr.bf16.mxu0 %v3731_v23  ;;  %v1960_v23 = vadd.bf16 %v1875_v13, %v1672_v19  ;;  %v1959_v20 = vadd.bf16 %v1870_v58, %v1671_v25  ;;  %v1999_v49 = vmul.bf16 1009007652, %v1967_v54  ;;  %v3781_v58 = vld [vmem:[%s5236_s5 + $0x18c] ss:$16 sps:$4 sm:$0xff]  }
 0x32d   : > { %v1973_v15 = vadd.bf16 %v1940_v46, %v1685_v2  ;;  %v1970_v46 = vadd.bf16 %v1925_v52, %v1682_v35  ;;  %v1993_v52 = vmul.bf16 1009007652, %v1961_v26  ;;  %v1905_v43 = vpop.permute.xlu0 %1904  ;;  %v2032_v2 = vmax.bf16 %v2000_v40, %v1968_v32  ;;  %v3748_v35 = vld [vmem:[%s5236_s5 + $0x28] ss:$16 sps:$4 sm:$0xff]  }
 0x32e   : > { %v1992_v19 = vmul.bf16 1009007652, %v1960_v23  ;;  %v1966_v44 = vadd.bf16 %v1905_v43, %v1678_v9  ;;  %v2031_v25 = vmax.bf16 %v1999_v49, %v1967_v54 }
 0x32f   : > { %v2005_v14 = vmul.bf16 1009007652, %v1973_v15  ;;  %v2002_v7 = vmul.bf16 1009007652, %v1970_v46  ;;  %v2025_v36 = vmax.bf16 %v1993_v52, %v1961_v26  ;;  %v1865_v4 = vpop.permute.xlu1 %1864 }
 0x330   : > { %v1958_v5 = vadd.bf16 %v1865_v4, %v1670_v37  ;;  %v2024_v33 = vmax.bf16 %v1992_v19, %v1960_v23  ;;  %v1998_v53 = vmul.bf16 1009007652, %v1966_v44  ;;  %v3746_v37 = vld [vmem:[%s5236_s5 + $0x2c] ss:$16 sps:$4 sm:$0xff]  }
 0x331   : > { %v2037_v0 = vmax.bf16 %v2005_v14, %v1973_v15  ;;  %v2034_v42 = vmax.bf16 %v2002_v7, %v1970_v46  ;;  %v1991_v15 = vmul.bf16 1009007652, %v1959_v20  ;;  %v3752_v14 = vld [vmem:[%s5236_s5 + $0x6c] ss:$16 sps:$4 sm:$0xff]  }
 0x332   : > { %v1990_v9 = vmul.bf16 1009007652, %v1958_v5  ;;  %v2030_v29 = vmax.bf16 %v1998_v53, %v1966_v44  ;;  %v3769_v46 = vld [vmem:[%s5236_s5 + $0x10c] ss:$16 sps:$4 sm:$0xff]  }
 0x333   : > { %2551 = vmatmul.mubr.bf16.gmra.mxu0 %v3733_v28  ;;  %3365 = vmatprep.subr.bf16.mxu0 %v2037_v0  ;;  %v2023_v27 = vmax.bf16 %v1991_v15, %v1959_v20  ;;  %v3754_v28 = vld [vmem:[%s5236_s5 + $0x68] ss:$16 sps:$4 sm:$0xff]   ;;  %v3760_v0 = vld [vmem:[%s5236_s5 + $0xac] ss:$16 sps:$4 sm:$0xff]  }
 0x334   : > { %3366 = vmatpush3.bf16.msra.mxu0 %v2029_v3  ;;  %2558 = vmatprep.mubr.bf16.mxu0 %v3734_v41  ;;  %v2022_v6 = vmax.bf16 %v1990_v9, %v1958_v5  ;;  %v3755_v41 = vld [vmem:[%s5236_s5 + $0x88] ss:$16 sps:$4 sm:$0xff]   ;;  %v3784_v19 = vld [vmem:[%s5236_s5 + $0x1ac] ss:$16 sps:$4 sm:$0xff]  }
 0x335   : > { %3367 = vmatprep.subr.bf16.mxu0 %v2036_v11  ;;  %v3761_v3 = vld [vmem:[%s5236_s5 + $0xc8] ss:$16 sps:$4 sm:$0xff]   ;;  %v3772_v11 = vld [vmem:[%s5236_s5 + $0x12c] ss:$16 sps:$4 sm:$0xff]  }
 0x336   : > { %v3779_v20 = vld [vmem:[%s5236_s5 + $0x188] ss:$16 sps:$4 sm:$0xff]  }
 0x337   : > { %v3782_v15 = vld [vmem:[%s5236_s5 + $0x1a8] ss:$16 sps:$4 sm:$0xff]  }
 0x338   : > { %3368 = vmatpush3.bf16.msra.mxu0 %v2028_v61 }
 0x339   : > { %3369 = vmatprep.subr.bf16.mxu0 %v2035_v24 }
 0x33b   : > { %2559 = vmatmul.mubr.bf16.gmra.mxu0 %v3736_v55 }
 0x33c   : > { %3370 = vmatpush3.bf16.msra.mxu0 %v2027_v57  ;;  %2566 = vmatprep.mubr.bf16.mxu0 %v3737_v10  ;;  %v3778_v57 = vld [vmem:[%s5236_s5 + $0x16c] ss:$16 sps:$4 sm:$0xff]  }
 0x33d   : > { %3371 = vmatprep.subr.bf16.mxu0 %v2034_v42 }
 0x340   : > { %3372 = vmatpush3.bf16.msra.mxu0 %v2026_v48  ;;  %v3776_v48 = vld [vmem:[%s5236_s5 + $0x168] ss:$16 sps:$4 sm:$0xff]  }
 0x341   : > { %3373 = vmatprep.subr.bf16.mxu0 %v2033_v45 }
 0x343   : > { %2567 = vmatmul.mubr.bf16.gmra.mxu0 %v3739_v31 }
 0x344   : > { %3374 = vmatpush3.bf16.msra.mxu0 %v2025_v36  ;;  %2574 = vmatprep.mubr.bf16.mxu0 %v3740_v62 }
 0x345   : > { %3375 = vmatprep.subr.bf16.mxu0 %v2032_v2 }
 0x348   : > { %3376 = vmatpush3.bf16.msra.mxu0 %v2024_v33  ;;  %v3787_v33 = vld [vmem:[%s5236_s5 + $0x1cc] ss:$16 sps:$4 sm:$0xff]  }
 0x349   : > { %3377 = vmatprep.subr.bf16.mxu0 %v2031_v25 }
 0x34b   : > { %2575 = vmatmul.mubr.bf16.gmra.mxu0 %v3742_v18 }
 0x34c   : > { %3378 = vmatpush3.bf16.msra.mxu0 %v2023_v27  ;;  %2615 = vmatprep.mubr.bf16.mxu0 %v3745_v34 }
 0x34d   : > { %3379 = vmatprep.subr.bf16.mxu0 %v2030_v29  ;;  %v3785_v29 = vld [vmem:[%s5236_s5 + $0x1c8] ss:$16 sps:$4 sm:$0xff]  }
 0x350   : > { %3380 = vmatpush3.bf16.msra.mxu0 %v2022_v6  ;;  %v3790_v6 = vld [vmem:[%s5236_s5 + $0x1ec] ss:$16 sps:$4 sm:$0xff]  }
 0x353   : > { %2616 = vmatmul.mubr.bf16.vlgmr.msra.gmra.mxu0 %v3743_v1 }
 0x354   : > { %2623 = vmatprep.mubr.bf16.mxu0 %v3746_v37 }
 0x35b   : > { %2624 = vmatmul.mubr.bf16.gmra.mxu0 %v3748_v35 }
 0x35c   : > { %2631 = vmatprep.mubr.bf16.mxu0 %v3749_v38 }
 0x363   : > { %2632 = vmatmul.mubr.bf16.gmra.mxu0 %v3751_v21 }
 0x364   : > { %2639 = vmatprep.mubr.bf16.mxu0 %v3752_v14 }
 0x36b   : > { %2640 = vmatmul.mubr.bf16.gmra.mxu0 %v3754_v28  ;;  %v3788_v28 = vld [vmem:[%s5236_s5 + $0x1e8] ss:$16 sps:$4 sm:$0xff]  }
 0x36c   : > { %2647 = vmatprep.mubr.bf16.mxu0 %v3757_v39 }
 0x373   : > { %2648 = vmatmul.mubr.bf16.gmra.mxu0 %v3755_v41 }
 0x374   : > { %2655 = vmatprep.mubr.bf16.mxu0 %v3760_v0 }
 0x37b   : > { %2656 = vmatmul.mubr.bf16.gmra.mxu0 %v3758_v63 }
 0x37c   : > { %2663 = vmatprep.mubr.bf16.mxu0 %v3763_v51 }
 0x383   : > { %2664 = vmatmul.mubr.bf16.gmra.mxu0 %v3761_v3 }
 0x384   : > { %2671 = vmatprep.mubr.bf16.mxu0 %v3766_v16 }
 0x38b   : > { %2672 = vmatmul.mubr.bf16.gmra.mxu0 %v3764_v59 }
 0x38c   : > { %2679 = vmatprep.mubr.bf16.mxu0 %v3769_v46 }
 0x393   : > { %v3269_v22 = vpop.f32.mrf.mxu0  ;;  %2680 = vmatmul.mubr.bf16.gmra.mxu0 %v3767_v8 }
 0x394   : > { %2687 = vmatprep.mubr.bf16.mxu0 %v3772_v11 }
 0x395   : > { %v3270_v56 = vpop.f32.mrf.mxu0 }
 0x396   : > { %v4952_v60 = vadd.f32 %v3270_v56, %v3269_v22 }
 0x397   : > { %v3272_v61 = vpop.f32.mrf.mxu0 }
 0x399   : > { %v3273_v7 = vpop.f32.mrf.mxu0 }
 0x39a   : > { %v4960_v24 = vadd.f32 %v3273_v7, %v3272_v61 }
 0x39b   : > { %v3275_v55 = vpop.f32.mrf.mxu0  ;;  %2688 = vmatmul.mubr.bf16.gmra.mxu0 %v3770_v17 }
 0x39c   : > { %2695 = vmatprep.mubr.bf16.mxu0 %v3775_v30 }
 0x39d   : > { %v3276_v10 = vpop.f32.mrf.mxu0 }
 0x39e   : > { %v4962_v13 = vadd.f32 %v3276_v10, %v3275_v55 }
 0x39f   : > { %v3278_v26 = vpop.f32.mrf.mxu0 }
 0x3a1   : > { %v3279_v32 = vpop.f32.mrf.mxu0 }
 0x3a2   : > { %v4970_v12 = vadd.f32 %v3279_v32, %v3278_v26 }
 0x3a3   : > { %v3281_v42 = vpop.f32.mrf.mxu0  ;;  %2696 = vmatmul.mubr.bf16.gmra.mxu0 %v3773_v50 }
 0x3a4   : > { %2703 = vmatprep.mubr.bf16.mxu0 %v3778_v57 }
 0x3a5   : > { %v3282_v47 = vpop.f32.mrf.mxu0 }
 0x3a6   : > { %v4972_v23 = vadd.f32 %v3282_v47, %v3281_v42 }
 0x3a7   : > { %v3284_v52 = vpop.f32.mrf.mxu0 }
 0x3a9   : > { %v3285_v54 = vpop.f32.mrf.mxu0 }
 0x3aa   : > { %v4980_v40 = vadd.f32 %v3285_v54, %v3284_v52 }
 0x3ab   : > { %v3287_v45 = vpop.f32.mrf.mxu0  ;;  %2704 = vmatmul.mubr.bf16.gmra.mxu0 %v3776_v48 }
 0x3ac   : > { %2711 = vmatprep.mubr.bf16.mxu0 %v3781_v58 }
 0x3ad   : > { %v3288_v31 = vpop.f32.mrf.mxu0 }
 0x3ae   : > { %v4982_v62 = vadd.f32 %v3288_v31, %v3287_v45 }
 0x3af   : > { %v3290_v43 = vpop.f32.mrf.mxu0 }
 0x3b1   : > { %v3291_v36 = vpop.f32.mrf.mxu0 }
 0x3b2   : > { %v4990_v44 = vadd.f32 %v3291_v36, %v3290_v43 }
 0x3b3   : > { %v3293_v49 = vpop.f32.mrf.mxu0  ;;  %2712 = vmatmul.mubr.bf16.gmra.mxu0 %v3779_v20 }
 0x3b4   : > { %2719 = vmatprep.mubr.bf16.mxu0 %v3784_v19 }
 0x3b5   : > { %v3294_v2 = vpop.f32.mrf.mxu0 }
 0x3b6   : > { %v4992_v4 = vadd.f32 %v3294_v2, %v3293_v49 }
 0x3b7   : > { %v3296_v5 = vpop.f32.mrf.mxu0 }
 0x3b9   : > { %v3297_v53 = vpop.f32.mrf.mxu0 }
 0x3ba   : > { %v5000_v25 = vadd.f32 %v3297_v53, %v3296_v5 }
 0x3bb   : > { %v3299_v18 = vpop.f32.mrf.mxu0  ;;  %2720 = vmatmul.mubr.bf16.gmra.mxu0 %v3782_v15 }
 0x3bc   : > { %2727 = vmatprep.mubr.bf16.mxu0 %v3787_v33 }
 0x3bd   : > { %v3300_v34 = vpop.f32.mrf.mxu0 }
 0x3be   : > { %v5002_v9 = vadd.f32 %v3300_v34, %v3299_v18 }
 0x3bf   : > { %v3302_v27 = vpop.f32.mrf.mxu0 }
 0x3c1   : > { %v3303_v1 = vpop.f32.mrf.mxu0 }
 0x3c2   : > { %v5010_v37 = vadd.f32 %v3303_v1, %v3302_v27 }
 0x3c3   : > { %v3305_v35 = vpop.f32.mrf.mxu0  ;;  %2728 = vmatmul.mubr.bf16.gmra.mxu0 %v3785_v29 }
 0x3c4   : > { %2735 = vmatprep.mubr.bf16.mxu0 %v3790_v6 }
 0x3c5   : > { %v3306_v38 = vpop.f32.mrf.mxu0 }
 0x3c6   : > { %v5012_v21 = vadd.f32 %v3306_v38, %v3305_v35 }
 0x3c7   : > { %v3308_v14 = vpop.f32.mrf.mxu0 }
 0x3c9   : > { %v3309_v39 = vpop.f32.mrf.mxu0 }
 0x3ca   : > { %v5017_v41 = vadd.f32 %v3309_v39, %v3308_v14 }
 0x3cb   : > { %v3311_v0 = vpop.f32.mrf.mxu0  ;;  %2736 = vmatmul.mubr.bf16.gmra.mxu0 %v3788_v28 }
 0x3cd   : > { %v3312_v63 = vpop.f32.mrf.mxu0 }
 0x3ce   : > { %v5019_v51 = vadd.f32 %v3312_v63, %v3311_v0 }
 0x3cf   : > { %v3314_v3 = vpop.f32.mrf.mxu0 }
 0x3d1   : > { %v3315_v16 = vpop.f32.mrf.mxu0 }
 0x3d2   : > { %v5021_v59 = vadd.f32 %v3315_v16, %v3314_v3 }
 0x3d3   : > { %v3317_v46 = vpop.f32.mrf.mxu0 }
 0x3d5   : > { %v3318_v8 = vpop.f32.mrf.mxu0 }
 0x3d6   : > { %v5023_v11 = vadd.f32 %v3318_v8, %v3317_v46 }
 0x3d7   : > { %v3320_v22 = vpop.f32.mrf.mxu0 }
 0x3d9   : > { %v3321_v56 = vpop.f32.mrf.mxu0 }
 0x3da   : > { %v5025_v61 = vadd.f32 %v3321_v56, %v3320_v22 }
 0x3db   : > { %v3323_v17 = vpop.f32.mrf.mxu0 }
 0x3dd   : > { %v3324_v30 = vpop.f32.mrf.mxu0 }
 0x3de   : > { %v5027_v7 = vadd.f32 %v3324_v30, %v3323_v17 }
 0x3df   : > { %v3326_v55 = vpop.f32.mrf.mxu0 }
 0x3e1   : > { %v3327_v10 = vpop.f32.mrf.mxu0 }
 0x3e2   : > { %v5029_v26 = vadd.f32 %v3327_v10, %v3326_v55 }
 0x3e3   : > { %v3329_v50 = vpop.f32.mrf.mxu0 }
 0x3e5   : > { %v3330_v57 = vpop.f32.mrf.mxu0 }
 0x3e6   : > { %v5031_v32 = vadd.f32 %v3330_v57, %v3329_v50 }
 0x3e7   : > { %v3332_v42 = vpop.f32.mrf.mxu0 }
 0x3e9   : > { %v3333_v47 = vpop.f32.mrf.mxu0 }
 0x3ea   : > { %v5033_v52 = vadd.f32 %v3333_v47, %v3332_v42 }
 0x3eb   : > { %v3335_v48 = vpop.f32.mrf.mxu0 }
 0x3ed   : > { %v3336_v58 = vpop.f32.mrf.mxu0 }
 0x3ee   : > { %v5035_v54 = vadd.f32 %v3336_v58, %v3335_v48 }
 0x3ef   : > { %v3338_v45 = vpop.f32.mrf.mxu0 }
 0x3f1   : > { %v3339_v31 = vpop.f32.mrf.mxu0 }
 0x3f2   : > { %v5037_v43 = vadd.f32 %v3339_v31, %v3338_v45 }
 0x3f3   : > { %v3341_v20 = vpop.f32.mrf.mxu0 }
 0x3f5   : > { %v3342_v19 = vpop.f32.mrf.mxu0 }
 0x3f6   : > { %v5039_v36 = vadd.f32 %v3342_v19, %v3341_v20 }
 0x3f7   : > { %v3344_v49 = vpop.f32.mrf.mxu0 }
 0x3f9   : > { %v3345_v2 = vpop.f32.mrf.mxu0 }
 0x3fa   : > { %v5041_v5 = vadd.f32 %v3345_v2, %v3344_v49 }
 0x3fb   : > { %v3347_v15 = vpop.f32.mrf.mxu0 }
 0x3fd   : > { %v3348_v33 = vpop.f32.mrf.mxu0 }
 0x3fe   : > { %v5043_v53 = vadd.f32 %v3348_v33, %v3347_v15 }
 0x3ff   : > { %v3350_v18 = vpop.f32.mrf.mxu0 }
 0x401   : > { %v3351_v34 = vpop.f32.mrf.mxu0 }
 0x402   : > { %v5045_v27 = vadd.f32 %v3351_v34, %v3350_v18 }
 0x403   : > { %v3353_v29 = vpop.f32.mrf.mxu0 }
 0x405   : > { %v3354_v6 = vpop.f32.mrf.mxu0 }
 0x406   : > { %v5047_v1 = vadd.f32 %v3354_v6, %v3353_v29 }
 0x407   : > { %v3356_v35 = vpop.f32.mrf.mxu0 }
 0x409   : > { %v3357_v38 = vpop.f32.mrf.mxu0 }
 0x40a   : > { %v5049_v14 = vadd.f32 %v3357_v38, %v3356_v35 }
 0x40b   : > { %v3359_v28 = vpop.f32.mrf.mxu0 }
 0x40d   : > { %v3360_v39 = vpop.f32.mrf.mxu0 }
 0x40e   : > { %v5051_v0 = vadd.f32 %v3360_v39, %v3359_v28 }
 0x40f   : > { %v3362_v63 = vpop.f32.mrf.mxu0 }
 0x411   : > { %v3363_v3 = vpop.f32.mrf.mxu0 }
 0x412   : > { %v5053_v16 = vadd.f32 %v3363_v3, %v3362_v63  ;;  %v2943_v63 = vlaneseq }
 0x413   : > { %v3381_v46 = vpop.f32.mrf.mxu0 }
 0x415   : > { %v3382_v8 = vpop.f32.mrf.mxu0 }
 0x416   : > { %v3383_v22 = vadd.f32 %v3382_v8, %v3381_v46  ;;  %v3816_v8 = vmov 1966171168  }
 0x417   : > { %v3384_v56 = vpop.f32.mrf.mxu0 }
 0x418   : > { %v5056_v17 = vadd.f32 %v3383_v22, %v4952_v60 }
 0x419   : > { %v3385_v30 = vpop.f32.mrf.mxu0 }
 0x41a   : > { %v3386_v55 = vadd.f32 %v3385_v30, %v3384_v56  ;;  %v5087_v30 = vshrl.u32 %v2943_v63, 7 }
 0x41b   : > { %v3387_v10 = vpop.f32.mrf.mxu0 }
 0x41c   : > { %v5059_v50 = vadd.f32 %v3386_v55, %v4960_v24 }
 0x41d   : > { %v3388_v57 = vpop.f32.mrf.mxu0 }
 0x41e   : > { %v3389_v47 = vadd.f32 %v3388_v57, %v3387_v10  ;;  %v5095_v57 = vld.sshfl [vmem:[%s5238_s7] sm:$0x11 pattern:$0x75316420] }
 0x41f   : > { %v3390_v48 = vpop.f32.mrf.mxu0 }
 0x420   : > { %v5064_v58 = vadd.f32 %v3389_v47, %v4962_v13  ;;  %v2955_v47 = vcombine.high %v5095_v57, %v5095_v57 }
 0x421   : > { %v3391_v45 = vpop.f32.mrf.mxu0 }
 0x422   : > { %v3392_v31 = vadd.f32 %v3391_v45, %v3390_v48 }
 0x423   : > { %v3393_v20 = vpop.f32.mrf.mxu0 }
 0x424   : > { %v5067_v60 = vadd.f32 %v3392_v31, %v4970_v12 }
 0x425   : > { %v3394_v19 = vpop.f32.mrf.mxu0 }
 0x426   : > { %v3395_v49 = vadd.f32 %v3394_v19, %v3393_v20 }
 0x427   : > { %v3396_v2 = vpop.f32.mrf.mxu0 }
 0x428   : > { %v5072_v15 = vadd.f32 %v3395_v49, %v4972_v23 }
 0x429   : > { %v3397_v33 = vpop.f32.mrf.mxu0 }
 0x42a   : > { %v3398_v18 = vadd.f32 %v3397_v33, %v3396_v2 }
 0x42b   : > { %v3399_v34 = vpop.f32.mrf.mxu0 }
 0x42c   : > { %v5075_v13 = vadd.f32 %v3398_v18, %v4980_v40  ;;  %v2957_v40 = vunpack.c.l.s4 %v3816_v8 }
 0x42d   : > { %v3400_v29 = vpop.f32.mrf.mxu0 }
 0x42e   : > { %v2746_v12 = vpack.c.bf16 %v5075_v13, %v5072_v15  ;;  %v3401_v6 = vadd.f32 %v3400_v29, %v3399_v34  ;;  %v2958_v10 = vunpack.c.0.s8 %v2957_v40 }
 0x42f   : > { %v3402_v35 = vpop.f32.mrf.mxu0 }
 0x430   : > { %v5080_v38 = vadd.f32 %v3401_v6, %v4982_v62  ;;  %v5100_v48 = vsub.s32 %v2958_v10, %v5087_v30 }
 0x431   : > { %v3403_v28 = vpop.f32.mrf.mxu0 }
 0x432   : > { %v3404_v39 = vadd.f32 %v3403_v28, %v3402_v35 }
 0x433   : > { %v3405_v23 = vpop.f32.mrf.mxu0 }
 0x434   : > { %v5083_v3 = vadd.f32 %v3404_v39, %v4990_v44 }
 0x435   : > { %v3406_v46 = vpop.f32.mrf.mxu0 }
 0x436   : > { %v2747_v22 = vpack.c.bf16 %v5083_v3, %v5080_v38  ;;  %v3407_v56 = vadd.f32 %v3406_v46, %v3405_v23 }
 0x437   : > { %v3408_v55 = vpop.f32.mrf.mxu0 }
 0x438   : > { %v5090_v62 = vadd.f32 %v3407_v56, %v4992_v4  ;;  %v2969_v4 = vrot.slane %v2955_v47, %v5100_v48 }
 0x439   : > { %v3409_v44 = vpop.f32.mrf.mxu0 }
 0x43a   : > { %v3410_v45 = vadd.f32 %v3409_v44, %v3408_v55  ;;  %3004 = vmatprep.mubr.bf16.mxu1 %v2969_v4 }
 0x43b   : > { %v3411_v31 = vpop.f32.mrf.mxu0 }
 0x43c   : > { %v5106_v19 = vadd.f32 %v3410_v45, %v5000_v25 }
 0x43d   : > { %v3412_v49 = vpop.f32.mrf.mxu0 }
 0x43e   : > { %v2748_v2 = vpack.c.bf16 %v5106_v19, %v5090_v62  ;;  %v3413_v33 = vadd.f32 %v3412_v49, %v3411_v31 }
 0x43f   : > { %v3414_v18 = vpop.f32.mrf.mxu0 }
 0x440   : > { %v5111_v34 = vadd.f32 %v3413_v33, %v5002_v9 }
 0x441   : > { %v3415_v29 = vpop.f32.mrf.mxu0 }
 0x442   : > { %v3416_v6 = vadd.f32 %v3415_v29, %v3414_v18 }
 0x443   : > { %v3417_v35 = vpop.f32.mrf.mxu0 }
 0x444   : > { %v5114_v28 = vadd.f32 %v3416_v6, %v5010_v37 }
 0x445   : > { %v3418_v39 = vpop.f32.mrf.mxu0 }
 0x446   : > { %v2749_v25 = vpack.c.bf16 %v5114_v28, %v5111_v34  ;;  %v3419_v63 = vadd.f32 %v3418_v39, %v3417_v35 }
 0x447   : > { %v3420_v23 = vpop.f32.mrf.mxu0 }
 0x448   : > { %v5119_v46 = vadd.f32 %v3419_v63, %v5012_v21 }
 0x449   : > { %v3421_v8 = vpop.f32.mrf.mxu0 }
 0x44a   : > { %v3422_v40 = vadd.f32 %v3421_v8, %v3420_v23 }
 0x44b   : > { %v3423_v56 = vpop.f32.mrf.mxu0 }
 0x44c   : > { %v5122_v9 = vadd.f32 %v3422_v40, %v5017_v41 }
 0x44d   : > { %v3424_v55 = vpop.f32.mrf.mxu0 }
 0x44e   : > { %v2750_v37 = vpack.c.bf16 %v5122_v9, %v5119_v46  ;;  %v3425_v10 = vadd.f32 %v3424_v55, %v3423_v56 }
 0x44f   : > { %v3426_v44 = vpop.f32.mrf.mxu0 }
 0x450   : > { %v5127_v47 = vadd.f32 %v3425_v10, %v5019_v51 }
 0x451   : > { %v3427_v45 = vpop.f32.mrf.mxu0 }
 0x452   : > { %v3428_v31 = vadd.f32 %v3427_v45, %v3426_v44 }
 0x453   : > { %v3429_v4 = vpop.f32.mrf.mxu0 }
 0x454   : > { %v5130_v21 = vadd.f32 %v3428_v31, %v5021_v59 }
 0x455   : > { %v3430_v49 = vpop.f32.mrf.mxu0 }
 0x456   : > { %v2751_v41 = vpack.c.bf16 %v5130_v21, %v5127_v47  ;;  %v3431_v33 = vadd.f32 %v3430_v49, %v3429_v4 }
 0x457   : > { %v3432_v18 = vpop.f32.mrf.mxu0 }
 0x458   : > { %v5135_v29 = vadd.f32 %v3431_v33, %v5023_v11 }
 0x459   : > { %v3433_v6 = vpop.f32.mrf.mxu0 }
 0x45a   : > { %v3434_v35 = vadd.f32 %v3433_v6, %v3432_v18 }
 0x45b   : > { %v3435_v39 = vpop.f32.mrf.mxu0 }
 0x45c   : > { %v5138_v51 = vadd.f32 %v3434_v35, %v5025_v61 }
 0x45d   : > { %v3436_v63 = vpop.f32.mrf.mxu0 }
 0x45e   : > { %v3437_v23 = vadd.f32 %v3436_v63, %v3435_v39 }
 0x45f   : > { %v3438_v8 = vpop.f32.mrf.mxu0 }
 0x460   : > { %v5143_v40 = vadd.f32 %v3437_v23, %v5027_v7 }
 0x461   : > { %v3439_v56 = vpop.f32.mrf.mxu0 }
 0x462   : > { %v3440_v55 = vadd.f32 %v3439_v56, %v3438_v8 }
 0x463   : > { %v3441_v10 = vpop.f32.mrf.mxu0 }
 0x464   : > { %v5146_v11 = vadd.f32 %v3440_v55, %v5029_v26 }
 0x465   : > { %v3442_v44 = vpop.f32.mrf.mxu0 }
 0x466   : > { %v3443_v45 = vadd.f32 %v3442_v44, %v3441_v10 }
 0x467   : > { %v3444_v31 = vpop.f32.mrf.mxu0 }
 0x468   : > { %v5151_v4 = vadd.f32 %v3443_v45, %v5031_v32 }
 0x469   : > { %v3445_v49 = vpop.f32.mrf.mxu0 }
 0x46a   : > { %v3446_v33 = vadd.f32 %v3445_v49, %v3444_v31 }
 0x46b   : > { %v3447_v18 = vpop.f32.mrf.mxu0 }
 0x46c   : > { %v5154_v7 = vadd.f32 %v3446_v33, %v5033_v52 }
 0x46d   : > { %v3448_v6 = vpop.f32.mrf.mxu0 }
 0x46e   : > { %v2754_v26 = vpack.c.bf16 %v5154_v7, %v5151_v4  ;;  %v3449_v39 = vadd.f32 %v3448_v6, %v3447_v18  ;;  %v5242_v7 = vpack.c.bf16 %v5067_v60, %v5064_v58 }
 0x46f   : > { %v3450_v35 = vpop.f32.mrf.mxu0 }
 0x470   : > { %v5159_v56 = vadd.f32 %v3449_v39, %v5035_v54 }
 0x471   : > { %v3451_v63 = vpop.f32.mrf.mxu0 }
 0x472   : > { %v3452_v23 = vadd.f32 %v3451_v63, %v3450_v35 }
 0x473   : > { %v3453_v8 = vpop.f32.mrf.mxu0 }
 0x474   : > { %v5162_v32 = vadd.f32 %v3452_v23, %v5037_v43  ;;  %v2886_v23 = vpop.permute.xlu0 %2885 }
 0x475   : > { %v3454_v55 = vpop.f32.mrf.mxu0 }
 0x476   : > { %v2755_v52 = vpack.c.bf16 %v5162_v32, %v5159_v56  ;;  %v3455_v44 = vadd.f32 %v3454_v55, %v3453_v8  ;;  %v2846_v55 = vpop.permute.xlu1 %2845 }
 0x477   : > { %v3456_v10 = vpop.f32.mrf.mxu0 }
 0x478   : > { %v2714_v33 = vadd.f32 %v3455_v44, %v5039_v36  ;;  %v2881_v36 = vpop.permute.xlu0 %2880 }
 0x479   : > { %v3457_v45 = vpop.f32.mrf.mxu0 }
 0x47a   : > { %v3458_v31 = vadd.f32 %v3457_v45, %v3456_v10 }
 0x47b   : > { %v3459_v49 = vpop.f32.mrf.mxu0 }
 0x47c   : > { %v2717_v18 = vadd.f32 %v3458_v31, %v5041_v5 }
 0x47d   : > { %v3460_v6 = vpop.f32.mrf.mxu0 }
 0x47e   : > { %v2756_v35 = vpack.c.bf16 %v2717_v18, %v2714_v33  ;;  %v3461_v39 = vadd.f32 %v3460_v6, %v3459_v49  ;;  %v2841_v33 = vpop.permute.xlu1 %2840 }
 0x47f   : > { %v3462_v54 = vpop.f32.mrf.mxu0 }
 0x480   : > { %v2722_v42 = vadd.f32 %v3461_v39, %v5043_v53 }
 0x481   : > { %v3463_v63 = vpop.f32.mrf.mxu0 }
 0x482   : > { %v3464_v43 = vadd.f32 %v3463_v63, %v3462_v54  ;;  %v2876_v63 = vpop.permute.xlu0 %2875 }
 0x483   : > { %v3465_v20 = vpop.f32.mrf.mxu0 }
 0x484   : > { %v2725_v59 = vadd.f32 %v3464_v43, %v5045_v27  ;;  %v2836_v43 = vpop.permute.xlu1 %2835 }
 0x485   : > { %v3466_v8 = vpop.f32.mrf.mxu0 }
 0x486   : > { %v2757_v10 = vpack.c.bf16 %v2725_v59, %v2722_v42  ;;  %v3467_v24 = vadd.f32 %v3466_v8, %v3465_v20  ;;  %v2871_v59 = vpop.permute.xlu0 %2870  ;;  %v2895_v8 = vadd.bf16 %v2846_v55, %v2751_v41 }
 0x487   : > { %v3468_v45 = vpop.f32.mrf.mxu0  ;;  %v2900_v55 = vadd.bf16 %v2871_v59, %v2756_v35 }
 0x488   : > { %v2730_v49 = vadd.f32 %v3467_v24, %v5047_v1 }
 0x489   : > { %v3469_v44 = vpop.f32.mrf.mxu0 }
 0x48a   : > { %v3470_v5 = vadd.f32 %v3469_v44, %v3468_v45  ;;  %v2894_v44 = vadd.bf16 %v2841_v33, %v2750_v37  ;;  %v2916_v33 = vmul.bf16 1009007652, %v2900_v55 }
 0x48b   : > { %v3471_v31 = vpop.f32.mrf.mxu0 }
 0x48c   : > { %v2733_v18 = vadd.f32 %v3470_v5, %v5049_v14  ;;  %v2831_v14 = vpop.permute.xlu1 %2830  ;;  %v2911_v5 = vmul.bf16 1009007652, %v2895_v8  ;;  %v2910_v47 = vmul.bf16 1009007652, %v2894_v44 }
 0x48d   : > { %v3472_v6 = vpop.f32.mrf.mxu0  ;;  %v2892_v9 = vadd.bf16 %v2831_v14, %v2748_v2 }
 0x48e   : > { %v2758_v54 = vpack.c.bf16 %v2733_v18, %v2730_v49  ;;  %v3473_v39 = vadd.f32 %v3472_v6, %v3471_v31  ;;  %v2901_v18 = vadd.bf16 %v2876_v63, %v2757_v10  ;;  %v2927_v21 = vmax.bf16 %v2911_v5, %v2895_v8 }
 0x48f   : > { %v3474_v53 = vpop.f32.mrf.mxu0  ;;  %v2926_v10 = vmax.bf16 %v2910_v47, %v2894_v44  ;;  %v2908_v35 = vmul.bf16 1009007652, %v2892_v9  ;;  %v2932_v63 = vmax.bf16 %v2916_v33, %v2900_v55 }
 0x490   : > { %v2738_v42 = vadd.f32 %v3473_v39, %v5051_v0  ;;  %v2902_v24 = vadd.bf16 %v2881_v36, %v2758_v54  ;;  %v2866_v0 = vpop.permute.xlu0 %2865  ;;  %v2826_v41 = vpop.permute.xlu1 %2825 }
 0x491   : > { %v3475_v27 = vpop.f32.mrf.mxu0  ;;  %v2899_v34 = vadd.bf16 %v2866_v0, %v2755_v52  ;;  %v2924_v52 = vmax.bf16 %v2908_v35, %v2892_v9 }
 0x492   : > { %v3476_v61 = vadd.f32 %v3475_v27, %v3474_v53  ;;  %v2918_v49 = vmul.bf16 1009007652, %v2902_v24 }
 0x493   : > { %v2915_v62 = vmul.bf16 1009007652, %v2899_v34 }
 0x494   : > { %v2741_v20 = vadd.f32 %v3476_v61, %v5053_v16  ;;  %v2893_v16 = vadd.bf16 %v2836_v43, %v2749_v25  ;;  %v2934_v61 = vmax.bf16 %v2918_v49, %v2902_v24  ;;  %v2861_v46 = vpop.permute.xlu0 %2860  ;;  %v2821_v28 = vpop.permute.xlu1 %2820  ;;  %v2891_v25 = vadd.bf16 %v2826_v41, %v2747_v22 }
 0x495   : > { %v2898_v19 = vadd.bf16 %v2861_v46, %v2754_v26  ;;  %v2890_v56 = vadd.bf16 %v2821_v28, %v2746_v12  ;;  %v2931_v38 = vmax.bf16 %v2915_v62, %v2899_v34  ;;  %v5241_v22 = vpack.c.bf16 %v5146_v11, %v5143_v40 }
 0x496   : > { %v2759_v1 = vpack.c.bf16 %v2741_v20, %v2738_v42  ;;  %v2909_v37 = vmul.bf16 1009007652, %v2893_v16  ;;  %v2907_v32 = vmul.bf16 1009007652, %v2891_v25  ;;  %v5243_v12 = vpack.c.bf16 %v5138_v51, %v5135_v29 }
 0x497   : > { %v2914_v3 = vmul.bf16 1009007652, %v2898_v19  ;;  %v2906_v27 = vmul.bf16 1009007652, %v2890_v56  ;;  %v5244_v40 = vpack.c.bf16 %v5059_v50, %v5056_v17  ;;  %v5245_v51 = vrot.slane %v5095_v57, %v5100_v48 }
 0x498   : > { %v2903_v45 = vadd.bf16 %v2886_v23, %v2759_v1  ;;  %v2917_v23 = vmul.bf16 1009007652, %v2901_v18  ;;  %v2925_v54 = vmax.bf16 %v2909_v37, %v2893_v16  ;;  %v2856_v2 = vpop.permute.xlu0 %2855  ;;  %v2816_v53 = vpop.permute.xlu1 %2815  ;;  %v2923_v43 = vmax.bf16 %v2907_v32, %v2891_v25 }
 0x499   : > { %v2897_v39 = vadd.bf16 %v2856_v2, %v5241_v22  ;;  %v2889_v26 = vadd.bf16 %v2816_v53, %v5242_v7  ;;  %v2930_v15 = vmax.bf16 %v2914_v3, %v2898_v19  ;;  %v2922_v8 = vmax.bf16 %v2906_v27, %v2890_v56 }
 0x49a   : > { %v2919_v31 = vmul.bf16 1009007652, %v2903_v45  ;;  %v2933_v36 = vmax.bf16 %v2917_v23, %v2901_v18  ;;  %v2945_v17 = vsub.s32 0, %v5087_v30 }
 0x49b   : > { %v2913_v13 = vmul.bf16 1009007652, %v2897_v39  ;;  %v2905_v59 = vmul.bf16 1009007652, %v2889_v26 }
 0x49c   : > { %v2935_v6 = vmax.bf16 %v2919_v31, %v2903_v45  ;;  %v2851_v4 = vpop.permute.xlu0 %2850  ;;  %v2811_v20 = vpop.permute.xlu1 %2810 }
 0x49d   : > { %v2896_v42 = vadd.bf16 %v2851_v4, %v5243_v12  ;;  %v2888_v11 = vadd.bf16 %v2811_v20, %v5244_v40  ;;  %v2929_v58 = vmax.bf16 %v2913_v13, %v2897_v39  ;;  %v2921_v24 = vmax.bf16 %v2905_v59, %v2889_v26 }
 0x49e   : > { %3477 = vmatprep.subr.bf16.mxu1 %v2935_v6 }
 0x49f   : > { %3478 = vmatpush3.bf16.msra.mxu1 %v2927_v21  ;;  %v2912_v60 = vmul.bf16 1009007652, %v2896_v42  ;;  %v2904_v1 = vmul.bf16 1009007652, %v2888_v11 }
 0x4a0   : > { %3479 = vmatprep.subr.bf16.mxu1 %v2934_v61  ;;  %v2941_v50 = vpop.permute.xlu0 %2940 }
 0x4a1   : > { %v2928_v14 = vmax.bf16 %v2912_v60, %v2896_v42  ;;  %v2920_v29 = vmax.bf16 %v2904_v1, %v2888_v11  ;;  %v2946_v5 = vrot.slane %v2941_v50, %v2945_v17 }
 0x4a3   : > { %3480 = vmatpush3.bf16.msra.mxu1 %v2926_v10 }
 0x4a4   : > { %3481 = vmatprep.subr.bf16.mxu1 %v2933_v36 }
 0x4a7   : > { %3482 = vmatpush3.bf16.msra.mxu1 %v2925_v54 }
 0x4a8   : > { %3483 = vmatprep.subr.bf16.mxu1 %v2932_v63 }
 0x4ab   : > { %3484 = vmatpush3.bf16.msra.mxu1 %v2924_v52 }
 0x4ac   : > { %3485 = vmatprep.subr.bf16.mxu1 %v2931_v38 }
 0x4af   : > { %3486 = vmatpush3.bf16.msra.mxu1 %v2923_v43 }
 0x4b0   : > { %3487 = vmatprep.subr.bf16.mxu1 %v2930_v15 }
 0x4b3   : > { %3488 = vmatpush3.bf16.msra.mxu1 %v2922_v8 }
 0x4b4   : > { %3489 = vmatprep.subr.bf16.mxu1 %v2929_v58 }
 0x4b7   : > { %3490 = vmatpush3.bf16.msra.mxu1 %v2921_v24 }
 0x4b8   : > { %3491 = vmatprep.subr.bf16.mxu1 %v2928_v14 }
 0x4bb   : > { %3492 = vmatpush3.bf16.msra.mxu1 %v2920_v29 }
 0x4be   : > { %3005 = vmatmul.mubr.bf16.vlgmr.msra.gmra.mxu1 %v5245_v51 }
 0x57e   : > { %v3493_v45 = vpop.f32.mrf.mxu1 }
 0x580   : > { %v3494_v44 = vpop.f32.mrf.mxu1 }
 0x581   : > { %v3495_v31 = vadd.f32 %v3494_v44, %v3493_v45 }
 0x582   : > { %v3496_v49 = vpop.f32.mrf.mxu1 }
 0x583   : > { %v3007_v18 = vadd.f32 %v3495_v31, %v2946_v5 }
 0x584   : > { %v3497_v0 = vpop.f32.mrf.mxu1 }
 0x585   : > { %3012 = vst [vmem:[%s433_s18] sm:$0x1] %v3007_v18 }
 0x586 PF: > { %p18_p9 = scmp.ge.s32.totalorder %s3887_s14, 5   ;;  %s5246_s11 = smov %s3809_s12 }
 0x587   : > { %s5247_s12 = smov %s3896_s17  ;;  %s5248_s13 = smov %s3887_s14 }
 0x588   :  { %20 = sbr.rel (!%p18_p9) target bundleno = 5 (0x5), region = 132 }

</bundles_post_ra>
